<compile_context>
chip_gen: v6e
topology: v6e:2x2x1
jax: 0.10.0
libtpu: 0.0.40
codegen_flags: <defaults>
</compile_context>

<pallas_src>
import functools

import jax
import jax.numpy as jnp
from jax import lax
from jax.experimental import pallas as pl
from jax.experimental.pallas import tpu as pltpu


# ----------------------------- fused BasicBlock kernel -----------------------------

def _basic_block_kernel(*refs, stride, equal_in_out):
    if equal_in_out:
        (x_ref, s1_ref, b1_ref, w1_ref, s2_ref, b2_ref, w2_ref,
         o_ref, xpad_ref, zpad_ref) = refs
        ws_ref = None
    else:
        (x_ref, s1_ref, b1_ref, w1_ref, s2_ref, b2_ref, w2_ref, ws_ref,
         o_ref, xpad_ref, zpad_ref) = refs

    h, w, cin = x_ref.shape[1], x_ref.shape[2], x_ref.shape[3]
    ho, wo, cout = o_ref.shape[1], o_ref.shape[2], o_ref.shape[3]

    # ---- BN1 + ReLU prologue (f32 VPU math) ----
    x = x_ref[0].astype(jnp.float32)                              # (h, w, cin)
    s1 = s1_ref[...].reshape(1, 1, cin)
    b1 = b1_ref[...].reshape(1, 1, cin)
    xn = jnp.maximum(x * s1 + b1, 0.0)                            # relu1(bn1(x)), f32

    # ---- halo pad in VMEM (no HBM jnp.pad pass) ----
    xpad_ref[...] = jnp.zeros(xpad_ref.shape, xpad_ref.dtype)
    xpad_ref[1:h + 1, 1:w + 1, :] = xn

    # ---- conv1: 3x3 / stride, im2col folded into one bf16 MXU matmul (K = 9*cin) ----
    taps = []
    for dy in range(3):
        for dx in range(3):
            if stride == 1:
                tap = xpad_ref[dy:dy + ho, dx:dx + wo, :]
            else:
                # strided patch read: only the needed output pixels are gathered
                tap = xpad_ref[pl.ds(dy, ho, stride), pl.ds(dx, wo, stride), :]
            taps.append(tap)                                      # (ho, wo, cin) f32
    a1 = jnp.concatenate(taps, axis=-1).reshape(ho * wo, 9 * cin)
    acc1 = jnp.dot(a1.astype(jnp.bfloat16), w1_ref[...],
                   preferred_element_type=jnp.float32)            # (ho*wo, cout) f32

    # ---- BN2 + ReLU epilogue applied to the f32 accumulator ----
    z = jnp.maximum(acc1 * s2_ref[...] + b2_ref[...], 0.0)
    # TODO(synk): dropout (dropRate > 0, training) not implemented; dropRate=0 / eval => no-op.

    # ---- conv2: 3x3 / stride 1, same im2col trick (K = 9*cout) ----
    zpad_ref[...] = jnp.zeros(zpad_ref.shape, zpad_ref.dtype)
    zpad_ref[1:ho + 1, 1:wo + 1, :] = z.reshape(ho, wo, cout)
    taps2 = [zpad_ref[dy:dy + ho, dx:dx + wo, :]
             for dy in range(3) for dx in range(3)]
    a2 = jnp.concatenate(taps2, axis=-1).reshape(ho * wo, 9 * cout)
    acc2 = jnp.dot(a2.astype(jnp.bfloat16), w2_ref[...],
                   preferred_element_type=jnp.float32)            # (ho*wo, cout) f32

    # ---- fused residual: identity, or 1x1-conv shortcut on strided relu1(bn1(x)) ----
    if equal_in_out:
        out3 = acc2.reshape(ho, wo, cout) + x_ref[0].astype(jnp.float32)
    else:
        # center tap (dy=dx=1) == xn[::stride, ::stride] -> exactly the 1x1-shortcut input
        center = taps[4].reshape(ho * wo, cin).astype(jnp.bfloat16)
        res = jnp.dot(center, ws_ref[...], preferred_element_type=jnp.float32)
        out3 = (acc2 + res).reshape(ho, wo, cout)

    o_ref[0] = out3.astype(o_ref.dtype)


# ------------------------------ Pallas wrappers ----------------------------

def basic_block_forward(x, p, stride):
    """One WideResNet BasicBlock as a single fused Pallas kernel.  x: NHWC."""
    x = x.astype(jnp.bfloat16)
    n, h, w, cin = x.shape
    cout = p['conv1_w'].shape[-1]
    equal_in_out = (cin == cout)                                  # matches PyTorch `equalInOut`
    if equal_in_out and stride != 1:
        raise ValueError("identity shortcut requires stride == 1 (as in the PyTorch module)")
    ho = (h - 1) // stride + 1
    wo = (w - 1) // stride + 1

    # HWIO (3,3,cin,cout) -> (9*cin, cout): K-index = (dy*3+dx)*cin + ci, matching the im2col.
    w1 = p['conv1_w'].reshape(9 * cin, cout).astype(jnp.bfloat16)
    w2 = p['conv2_w'].reshape(9 * cout, cout).astype(jnp.bfloat16)
    s1 = p['bn1_scale'].reshape(1, cin).astype(jnp.float32)
    b1 = p['bn1_bias'].reshape(1, cin).astype(jnp.float32)
    s2 = p['bn2_scale'].reshape(1, cout).astype(jnp.float32)
    b2 = p['bn2_bias'].reshape(1, cout).astype(jnp.float32)

    args = [x, s1, b1, w1, s2, b2, w2]
    in_specs = [
        pl.BlockSpec((1, h, w, cin), lambda i: (i, 0, 0, 0)),
        pl.BlockSpec((1, cin), lambda i: (0, 0)),
        pl.BlockSpec((1, cin), lambda i: (0, 0)),
        pl.BlockSpec((9 * cin, cout), lambda i: (0, 0)),
        pl.BlockSpec((1, cout), lambda i: (0, 0)),
        pl.BlockSpec((1, cout), lambda i: (0, 0)),
        pl.BlockSpec((9 * cout, cout), lambda i: (0, 0)),
    ]
    if not equal_in_out:
        args.append(p['short_w'].astype(jnp.bfloat16))
        in_specs.append(pl.BlockSpec((cin, cout), lambda i: (0, 0)))

    kernel = functools.partial(_basic_block_kernel,
                               stride=stride, equal_in_out=equal_in_out)
    return pl.pallas_call(
        kernel,
        out_shape=jax.ShapeDtypeStruct((n, ho, wo, cout), jnp.bfloat16),
        grid=(n,),
        in_specs=in_specs,
        out_specs=pl.BlockSpec((1, ho, wo, cout), lambda i: (i, 0, 0, 0)),
        scratch_shapes=[
            pltpu.VMEM((h + 2, w + 2, cin), jnp.float32),     # conv1 halo scratch
            pltpu.VMEM((ho + 2, wo + 2, cout), jnp.float32),  # conv2 halo scratch
        ],
        compiler_params=pltpu.CompilerParams(
            dimension_semantics=("parallel",)),               # v7x: shard batch over 2 TCs
    )(*args)


def network_block_forward(x_nchw, params, stride):
    # layout: NCHW (PyTorch input) -> NHWC internally -> NCHW output
    x = jnp.transpose(x_nchw, (0, 2, 3, 1))
    for i, p in enumerate(params):
        x = basic_block_forward(x, p, stride if i == 0 else 1)
    return jnp.transpose(x, (0, 3, 1, 2)).astype(jnp.float32)


# --------------------------- deterministic params --------------------------

def make_bn_params(key, c, eps=1e-5):
    k1, k2, k3, k4 = jax.random.split(key, 4)
    gamma = 1.0 + 0.1 * jax.random.normal(k1, (c,), jnp.float32)
    beta = 0.1 * jax.random.normal(k2, (c,), jnp.float32)
    mean = 0.1 * jax.random.normal(k3, (c,), jnp.float32)
    var = 1.0 + 0.1 * jax.random.uniform(k4, (c,), jnp.float32)
    scale = gamma / jnp.sqrt(var + eps)
    bias = beta - mean * scale
    return scale, bias


def make_block_params(key, cin, cout):
    ks = jax.random.split(key, 5)
    p = {}
    p['bn1_scale'], p['bn1_bias'] = make_bn_params(ks[0], cin)
    p['conv1_w'] = jax.random.normal(ks[1], (3, 3, cin, cout), jnp.float32) * (2.0 / (9 * cin)) ** 0.5
    p['bn2_scale'], p['bn2_bias'] = make_bn_params(ks[2], cout)
    p['conv2_w'] = jax.random.normal(ks[3], (3, 3, cout, cout), jnp.float32) * (2.0 / (9 * cout)) ** 0.5
    if cin != cout:
        p['short_w'] = jax.random.normal(ks[4], (cin, cout), jnp.float32) * (2.0 / cin) ** 0.5
    return p


# ------------------------------ pure-JAX ref --------------------------------

def _ref_conv(x, w, stride, pad):
    return lax.conv_general_dilated(
        x, w, (stride, stride), ((pad, pad), (pad, pad)),
        dimension_numbers=('NHWC', 'HWIO', 'NHWC'))


def _ref_block(x, p, stride):
    cin = x.shape[-1]
    cout = p['conv1_w'].shape[-1]
    equal = cin == cout
    xn = jnp.maximum(x * p['bn1_scale'] + p['bn1_bias'], 0.0)
    out = _ref_conv(xn, p['conv1_w'], stride, 1)
    outn = jnp.maximum(out * p['bn2_scale'] + p['bn2_bias'], 0.0)
    out2 = _ref_conv(outn, p['conv2_w'], 1, 1)
    if equal:
        res = x
    else:
        res = _ref_conv(xn, p['short_w'].reshape(1, 1, cin, cout), stride, 0)
    return out2 + res


# ---------------------------------- main ------------------------------------

if __name__ == "__main__":

    def run_case(name, n, c_in, h, w, c_out, nb_layers, stride, key):
        kx, kp = jax.random.split(key)
        x = jax.random.normal(kx, (n, c_in, h, w), jnp.float32)   # NCHW, like PyTorch
        pkeys = jax.random.split(kp, nb_layers)
        params = [make_block_params(pkeys[i], c_in if i == 0 else c_out, c_out)
                  for i in range(nb_layers)]

        out = jax.block_until_ready(network_block_forward(x, params, stride))

        # pure-JAX reference (f32, no torch)
        xr = jnp.transpose(x, (0, 2, 3, 1))
        for i, p in enumerate(params):
            xr = _ref_block(xr, p, stride if i == 0 else 1)
        ref = jnp.transpose(xr, (0, 3, 1, 2))

        exp_shape = (n, c_out, (h - 1) // stride + 1, (w - 1) // stride + 1)
        assert out.shape == ref.shape == exp_shape, (name, out.shape)
        err = float(jnp.max(jnp.abs(out - ref)))
        scale = float(jnp.max(jnp.abs(ref)))
        # bf16 matmul operands (f32 accumulation) over 2 stacked blocks: allow a few % rel. error.
        assert err <= 5e-2 * scale + 5e-2, (name, err, scale)

    key = jax.random.PRNGKey(0)
    k1, k2 = jax.random.split(key)
    # tiny config from the spec example (correctness smoke test; lane-sparse channels)
    run_case("tiny", 2, 4, 16, 16, 8, 2, 2, k1)
    # WRN-like channel counts: cout=128 -> lane-dense output stores, K=9*cin>=576 on the MXU
    run_case("wrn", 2, 64, 16, 16, 128, 2, 2, k2)

    print("KERNEL_OK")
</pallas_src>

<mosaic_0001>
module attributes {stable_mosaic.version = 11 : i64} {
  func.func @_basic_block_kernel(%arg0: i32, %arg1: memref<1x16x16x4xbf16, #tpu.memory_space<vmem>>, %arg2: memref<1x4xf32, #tpu.memory_space<vmem>>, %arg3: memref<1x4xf32, #tpu.memory_space<vmem>>, %arg4: memref<36x8xbf16, #tpu.memory_space<vmem>>, %arg5: memref<1x8xf32, #tpu.memory_space<vmem>>, %arg6: memref<1x8xf32, #tpu.memory_space<vmem>>, %arg7: memref<72x8xbf16, #tpu.memory_space<vmem>>, %arg8: memref<4x8xbf16, #tpu.memory_space<vmem>>, %arg9: memref<1x8x8x8xbf16, #tpu.memory_space<vmem>>, %arg10: memref<18x18x4xf32, #tpu.memory_space<vmem>>, %arg11: memref<10x10x8xf32, #tpu.memory_space<vmem>>) attributes {dimension_semantics = [#tpu.dimension_semantics<parallel>], iteration_bounds = array<i64: 2>, scalar_prefetch = 0 : i64, scratch_operands = 2 : i64, tpu.core_type = #tpu.core_type<tc>, window_params = [{transform_indices = @transform_0, window_bounds = array<i64: 1, 16, 16, 4>}, {pipeline_mode = #tpu.pipeline_mode<synchronous>, transform_indices = @transform_1, window_bounds = array<i64: 1, 4>}, {pipeline_mode = #tpu.pipeline_mode<synchronous>, transform_indices = @transform_2, window_bounds = array<i64: 1, 4>}, {pipeline_mode = #tpu.pipeline_mode<synchronous>, transform_indices = @transform_3, window_bounds = array<i64: 36, 8>}, {pipeline_mode = #tpu.pipeline_mode<synchronous>, transform_indices = @transform_4, window_bounds = array<i64: 1, 8>}, {pipeline_mode = #tpu.pipeline_mode<synchronous>, transform_indices = @transform_5, window_bounds = array<i64: 1, 8>}, {pipeline_mode = #tpu.pipeline_mode<synchronous>, transform_indices = @transform_6, window_bounds = array<i64: 72, 8>}, {pipeline_mode = #tpu.pipeline_mode<synchronous>, transform_indices = @transform_7, window_bounds = array<i64: 4, 8>}, {transform_indices = @transform_8, window_bounds = array<i64: 1, 8, 8, 8>}]} {
    %c0 = arith.constant 0 : index
    %c0_0 = arith.constant 0 : index
    %c0_1 = arith.constant 0 : index
    %c0_2 = arith.constant 0 : index
    %0 = vector.load %arg1[%c0, %c0_0, %c0_1, %c0_2] : memref<1x16x16x4xbf16, #tpu.memory_space<vmem>>, vector<1x16x16x4xbf16>
    %1 = vector.shape_cast %0 : vector<1x16x16x4xbf16> to vector<16x16x4xbf16>
    %2 = arith.extf %1 : vector<16x16x4xbf16> to vector<16x16x4xf32>
    %c0_3 = arith.constant 0 : index
    %c0_4 = arith.constant 0 : index
    %3 = vector.load %arg2[%c0_3, %c0_4] : memref<1x4xf32, #tpu.memory_space<vmem>>, vector<1x4xf32>
    %4 = vector.shape_cast %3 : vector<1x4xf32> to vector<1x1x4xf32>
    %c0_5 = arith.constant 0 : index
    %c0_6 = arith.constant 0 : index
    %5 = vector.load %arg3[%c0_5, %c0_6] : memref<1x4xf32, #tpu.memory_space<vmem>>, vector<1x4xf32>
    %6 = vector.shape_cast %5 : vector<1x4xf32> to vector<1x1x4xf32>
    %7 = vector.broadcast %4 : vector<1x1x4xf32> to vector<16x16x4xf32>
    %8 = arith.mulf %2, %7 : vector<16x16x4xf32>
    %9 = vector.broadcast %6 : vector<1x1x4xf32> to vector<16x16x4xf32>
    %10 = arith.addf %8, %9 : vector<16x16x4xf32>
    %cst = arith.constant 0.000000e+00 : f32
    %11 = vector.broadcast %cst : f32 to vector<16x16x4xf32>
    %12 = arith.maximumf %10, %11 : vector<16x16x4xf32>
    %cst_7 = arith.constant 0.000000e+00 : f32
    %13 = vector.broadcast %cst_7 : f32 to vector<18x18x4xf32>
    %c0_8 = arith.constant 0 : index
    %c0_9 = arith.constant 0 : index
    %c0_10 = arith.constant 0 : index
    %14 = vector.load %arg10[%c0_8, %c0_9, %c0_10] : memref<18x18x4xf32, #tpu.memory_space<vmem>>, vector<18x18x4xf32>
    tpu.vector_store %arg10[%c0_8, %c0_9, %c0_10], %13 {strides = array<i32>} : memref<18x18x4xf32, #tpu.memory_space<vmem>>, vector<18x18x4xf32>,
    %c1 = arith.constant 1 : index
    %c1_11 = arith.constant 1 : index
    %c0_12 = arith.constant 0 : index
    %15 = vector.load %arg10[%c1, %c1_11, %c0_12] : memref<18x18x4xf32, #tpu.memory_space<vmem>>, vector<16x16x4xf32>
    tpu.vector_store %arg10[%c1, %c1_11, %c0_12], %12 {strides = array<i32>} : memref<18x18x4xf32, #tpu.memory_space<vmem>>, vector<16x16x4xf32>,
    %c0_13 = arith.constant 0 : index
    %c0_14 = arith.constant 0 : index
    %c0_15 = arith.constant 0 : index
    %16 = tpu.strided_load %arg10[%c0_13, %c0_14, %c0_15] {strides = array<i32: 2, 2, 1>} : memref<18x18x4xf32, #tpu.memory_space<vmem>>, vector<8x8x4xf32>
    %c0_16 = arith.constant 0 : index
    %c1_17 = arith.constant 1 : index
    %c0_18 = arith.constant 0 : index
    %17 = tpu.strided_load %arg10[%c0_16, %c1_17, %c0_18] {strides = array<i32: 2, 2, 1>} : memref<18x18x4xf32, #tpu.memory_space<vmem>>, vector<8x8x4xf32>
    %c0_19 = arith.constant 0 : index
    %c2 = arith.constant 2 : index
    %c0_20 = arith.constant 0 : index
    %18 = tpu.strided_load %arg10[%c0_19, %c2, %c0_20] {strides = array<i32: 2, 2, 1>} : memref<18x18x4xf32, #tpu.memory_space<vmem>>, vector<8x8x4xf32>
    %c1_21 = arith.constant 1 : index
    %c0_22 = arith.constant 0 : index
    %c0_23 = arith.constant 0 : index
    %19 = tpu.strided_load %arg10[%c1_21, %c0_22, %c0_23] {strides = array<i32: 2, 2, 1>} : memref<18x18x4xf32, #tpu.memory_space<vmem>>, vector<8x8x4xf32>
    %c1_24 = arith.constant 1 : index
    %c1_25 = arith.constant 1 : index
    %c0_26 = arith.constant 0 : index
    %20 = tpu.strided_load %arg10[%c1_24, %c1_25, %c0_26] {strides = array<i32: 2, 2, 1>} : memref<18x18x4xf32, #tpu.memory_space<vmem>>, vector<8x8x4xf32>
    %c1_27 = arith.constant 1 : index
    %c2_28 = arith.constant 2 : index
    %c0_29 = arith.constant 0 : index
    %21 = tpu.strided_load %arg10[%c1_27, %c2_28, %c0_29] {strides = array<i32: 2, 2, 1>} : memref<18x18x4xf32, #tpu.memory_space<vmem>>, vector<8x8x4xf32>
    %c2_30 = arith.constant 2 : index
    %c0_31 = arith.constant 0 : index
    %c0_32 = arith.constant 0 : index
    %22 = tpu.strided_load %arg10[%c2_30, %c0_31, %c0_32] {strides = array<i32: 2, 2, 1>} : memref<18x18x4xf32, #tpu.memory_space<vmem>>, vector<8x8x4xf32>
    %c2_33 = arith.constant 2 : index
    %c1_34 = arith.constant 1 : index
    %c0_35 = arith.constant 0 : index
    %23 = tpu.strided_load %arg10[%c2_33, %c1_34, %c0_35] {strides = array<i32: 2, 2, 1>} : memref<18x18x4xf32, #tpu.memory_space<vmem>>, vector<8x8x4xf32>
    %c2_36 = arith.constant 2 : index
    %c2_37 = arith.constant 2 : index
    %c0_38 = arith.constant 0 : index
    %24 = tpu.strided_load %arg10[%c2_36, %c2_37, %c0_38] {strides = array<i32: 2, 2, 1>} : memref<18x18x4xf32, #tpu.memory_space<vmem>>, vector<8x8x4xf32>
    %25 = tpu.concatenate %16, %17, %18, %19, %20, %21, %22, %23, %24 in 2 : vector<8x8x4xf32>, vector<8x8x4xf32>, vector<8x8x4xf32>, vector<8x8x4xf32>, vector<8x8x4xf32>, vector<8x8x4xf32>, vector<8x8x4xf32>, vector<8x8x4xf32>, vector<8x8x4xf32> -> vector<8x8x36xf32>
    %26 = vector.shape_cast %25 : vector<8x8x36xf32> to vector<64x36xf32>
    %27 = arith.truncf %26 : vector<64x36xf32> to vector<64x36xbf16>
    %c0_39 = arith.constant 0 : index
    %c0_40 = arith.constant 0 : index
    %28 = vector.load %arg4[%c0_39, %c0_40] : memref<36x8xbf16, #tpu.memory_space<vmem>>, vector<36x8xbf16>
    %cst_41 = arith.constant dense<0.000000e+00> : vector<64x8xf32>
    %29 = tpu.matmul %27, %28, %cst_41 {dimension_numbers = #tpu.dot_dimension_numbers<[1], [0], [0], [1], [0, 0, 1, 1], [], []>} : vector<64x36xbf16>, vector<36x8xbf16>, vector<64x8xf32> -> vector<64x8xf32>
    %c0_42 = arith.constant 0 : index
    %c0_43 = arith.constant 0 : index
    %30 = vector.load %arg5[%c0_42, %c0_43] : memref<1x8xf32, #tpu.memory_space<vmem>>, vector<1x8xf32>
    %31 = vector.broadcast %30 : vector<1x8xf32> to vector<64x8xf32>
    %32 = arith.mulf %29, %31 : vector<64x8xf32>
    %c0_44 = arith.constant 0 : index
    %c0_45 = arith.constant 0 : index
    %33 = vector.load %arg6[%c0_44, %c0_45] : memref<1x8xf32, #tpu.memory_space<vmem>>, vector<1x8xf32>
    %34 = vector.broadcast %33 : vector<1x8xf32> to vector<64x8xf32>
    %35 = arith.addf %32, %34 : vector<64x8xf32>
    %cst_46 = arith.constant 0.000000e+00 : f32
    %36 = vector.broadcast %cst_46 : f32 to vector<64x8xf32>
    %37 = arith.maximumf %35, %36 : vector<64x8xf32>
    %cst_47 = arith.constant 0.000000e+00 : f32
    %38 = vector.broadcast %cst_47 : f32 to vector<10x10x8xf32>
    %c0_48 = arith.constant 0 : index
    %c0_49 = arith.constant 0 : index
    %c0_50 = arith.constant 0 : index
    %39 = vector.load %arg11[%c0_48, %c0_49, %c0_50] : memref<10x10x8xf32, #tpu.memory_space<vmem>>, vector<10x10x8xf32>
    tpu.vector_store %arg11[%c0_48, %c0_49, %c0_50], %38 {strides = array<i32>} : memref<10x10x8xf32, #tpu.memory_space<vmem>>, vector<10x10x8xf32>,
    %40 = vector.shape_cast %37 : vector<64x8xf32> to vector<8x8x8xf32>
    %c1_51 = arith.constant 1 : index
    %c1_52 = arith.constant 1 : index
    %c0_53 = arith.constant 0 : index
    %41 = vector.load %arg11[%c1_51, %c1_52, %c0_53] : memref<10x10x8xf32, #tpu.memory_space<vmem>>, vector<8x8x8xf32>
    tpu.vector_store %arg11[%c1_51, %c1_52, %c0_53], %40 {strides = array<i32>} : memref<10x10x8xf32, #tpu.memory_space<vmem>>, vector<8x8x8xf32>,
    %c0_54 = arith.constant 0 : index
    %c0_55 = arith.constant 0 : index
    %c0_56 = arith.constant 0 : index
    %42 = vector.load %arg11[%c0_54, %c0_55, %c0_56] : memref<10x10x8xf32, #tpu.memory_space<vmem>>, vector<8x8x8xf32>
    %c0_57 = arith.constant 0 : index
    %c1_58 = arith.constant 1 : index
    %c0_59 = arith.constant 0 : index
    %43 = vector.load %arg11[%c0_57, %c1_58, %c0_59] : memref<10x10x8xf32, #tpu.memory_space<vmem>>, vector<8x8x8xf32>
    %c0_60 = arith.constant 0 : index
    %c2_61 = arith.constant 2 : index
    %c0_62 = arith.constant 0 : index
    %44 = vector.load %arg11[%c0_60, %c2_61, %c0_62] : memref<10x10x8xf32, #tpu.memory_space<vmem>>, vector<8x8x8xf32>
    %c1_63 = arith.constant 1 : index
    %c0_64 = arith.constant 0 : index
    %c0_65 = arith.constant 0 : index
    %45 = vector.load %arg11[%c1_63, %c0_64, %c0_65] : memref<10x10x8xf32, #tpu.memory_space<vmem>>, vector<8x8x8xf32>
    %c1_66 = arith.constant 1 : index
    %c1_67 = arith.constant 1 : index
    %c0_68 = arith.constant 0 : index
    %46 = vector.load %arg11[%c1_66, %c1_67, %c0_68] : memref<10x10x8xf32, #tpu.memory_space<vmem>>, vector<8x8x8xf32>
    %c1_69 = arith.constant 1 : index
    %c2_70 = arith.constant 2 : index
    %c0_71 = arith.constant 0 : index
    %47 = vector.load %arg11[%c1_69, %c2_70, %c0_71] : memref<10x10x8xf32, #tpu.memory_space<vmem>>, vector<8x8x8xf32>
    %c2_72 = arith.constant 2 : index
    %c0_73 = arith.constant 0 : index
    %c0_74 = arith.constant 0 : index
    %48 = vector.load %arg11[%c2_72, %c0_73, %c0_74] : memref<10x10x8xf32, #tpu.memory_space<vmem>>, vector<8x8x8xf32>
    %c2_75 = arith.constant 2 : index
    %c1_76 = arith.constant 1 : index
    %c0_77 = arith.constant 0 : index
    %49 = vector.load %arg11[%c2_75, %c1_76, %c0_77] : memref<10x10x8xf32, #tpu.memory_space<vmem>>, vector<8x8x8xf32>
    %c2_78 = arith.constant 2 : index
    %c2_79 = arith.constant 2 : index
    %c0_80 = arith.constant 0 : index
    %50 = vector.load %arg11[%c2_78, %c2_79, %c0_80] : memref<10x10x8xf32, #tpu.memory_space<vmem>>, vector<8x8x8xf32>
    %51 = tpu.concatenate %42, %43, %44, %45, %46, %47, %48, %49, %50 in 2 : vector<8x8x8xf32>, vector<8x8x8xf32>, vector<8x8x8xf32>, vector<8x8x8xf32>, vector<8x8x8xf32>, vector<8x8x8xf32>, vector<8x8x8xf32>, vector<8x8x8xf32>, vector<8x8x8xf32> -> vector<8x8x72xf32>
    %52 = vector.shape_cast %51 : vector<8x8x72xf32> to vector<64x72xf32>
    %53 = arith.truncf %52 : vector<64x72xf32> to vector<64x72xbf16>
    %c0_81 = arith.constant 0 : index
    %c0_82 = arith.constant 0 : index
    %54 = vector.load %arg7[%c0_81, %c0_82] : memref<72x8xbf16, #tpu.memory_space<vmem>>, vector<72x8xbf16>
    %cst_83 = arith.constant dense<0.000000e+00> : vector<64x8xf32>
    %55 = tpu.matmul %53, %54, %cst_83 {dimension_numbers = #tpu.dot_dimension_numbers<[1], [0], [0], [1], [0, 0, 1, 1], [], []>} : vector<64x72xbf16>, vector<72x8xbf16>, vector<64x8xf32> -> vector<64x8xf32>
    %56 = vector.shape_cast %20 : vector<8x8x4xf32> to vector<64x4xf32>
    %57 = arith.truncf %56 : vector<64x4xf32> to vector<64x4xbf16>
    %c0_84 = arith.constant 0 : index
    %c0_85 = arith.constant 0 : index
    %58 = vector.load %arg8[%c0_84, %c0_85] : memref<4x8xbf16, #tpu.memory_space<vmem>>, vector<4x8xbf16>
    %cst_86 = arith.constant dense<0.000000e+00> : vector<64x8xf32>
    %59 = tpu.matmul %57, %58, %cst_86 {dimension_numbers = #tpu.dot_dimension_numbers<[1], [0], [0], [1], [0, 0, 1, 1], [], []>} : vector<64x4xbf16>, vector<4x8xbf16>, vector<64x8xf32> -> vector<64x8xf32>
    %60 = arith.addf %55, %59 : vector<64x8xf32>
    %61 = vector.shape_cast %60 : vector<64x8xf32> to vector<8x8x8xf32>
    %62 = arith.truncf %61 : vector<8x8x8xf32> to vector<8x8x8xbf16>
    %c0_87 = arith.constant 0 : index
    %c0_88 = arith.constant 0 : index
    %c0_89 = arith.constant 0 : index
    %c0_90 = arith.constant 0 : index
    %63 = vector.load %arg9[%c0_87, %c0_88, %c0_89, %c0_90] : memref<1x8x8x8xbf16, #tpu.memory_space<vmem>>, vector<1x8x8x8xbf16>
    %64 = vector.shape_cast %63 : vector<1x8x8x8xbf16> to vector<8x8x8xbf16>
    %65 = vector.shape_cast %62 : vector<8x8x8xbf16> to vector<1x8x8x8xbf16>
    tpu.vector_store %arg9[%c0_87, %c0_88, %c0_89, %c0_90], %65 {strides = array<i32>} : memref<1x8x8x8xbf16, #tpu.memory_space<vmem>>, vector<1x8x8x8xbf16>,
    return
  }
  func.func @transform_0(%arg0: i32) -> (i32, i32, i32, i32) {
    %c0_i32 = arith.constant 0 : i32
    %c0_i32_0 = arith.constant 0 : i32
    %c0_i32_1 = arith.constant 0 : i32
    %c0_i32_2 = arith.constant 0 : i32
    return %arg0, %c0_i32, %c0_i32_0, %c0_i32_1 : i32, i32, i32, i32
  }
  func.func @transform_1(%arg0: i32) -> (i32, i32) {
    %c0_i32 = arith.constant 0 : i32
    %c0_i32_0 = arith.constant 0 : i32
    %c0_i32_1 = arith.constant 0 : i32
    return %c0_i32, %c0_i32_0 : i32, i32
  }
  func.func @transform_2(%arg0: i32) -> (i32, i32) {
    %c0_i32 = arith.constant 0 : i32
    %c0_i32_0 = arith.constant 0 : i32
    %c0_i32_1 = arith.constant 0 : i32
    return %c0_i32, %c0_i32_0 : i32, i32
  }
  func.func @transform_3(%arg0: i32) -> (i32, i32) {
    %c0_i32 = arith.constant 0 : i32
    %c0_i32_0 = arith.constant 0 : i32
    %c0_i32_1 = arith.constant 0 : i32
    return %c0_i32, %c0_i32_0 : i32, i32
  }
  func.func @transform_4(%arg0: i32) -> (i32, i32) {
    %c0_i32 = arith.constant 0 : i32
    %c0_i32_0 = arith.constant 0 : i32
    %c0_i32_1 = arith.constant 0 : i32
    return %c0_i32, %c0_i32_0 : i32, i32
  }
  func.func @transform_5(%arg0: i32) -> (i32, i32) {
    %c0_i32 = arith.constant 0 : i32
    %c0_i32_0 = arith.constant 0 : i32
    %c0_i32_1 = arith.constant 0 : i32
    return %c0_i32, %c0_i32_0 : i32, i32
  }
  func.func @transform_6(%arg0: i32) -> (i32, i32) {
    %c0_i32 = arith.constant 0 : i32
    %c0_i32_0 = arith.constant 0 : i32
    %c0_i32_1 = arith.constant 0 : i32
    return %c0_i32, %c0_i32_0 : i32, i32
  }
  func.func @transform_7(%arg0: i32) -> (i32, i32) {
    %c0_i32 = arith.constant 0 : i32
    %c0_i32_0 = arith.constant 0 : i32
    %c0_i32_1 = arith.constant 0 : i32
    return %c0_i32, %c0_i32_0 : i32, i32
  }
  func.func @transform_8(%arg0: i32) -> (i32, i32, i32, i32) {
    %c0_i32 = arith.constant 0 : i32
    %c0_i32_0 = arith.constant 0 : i32
    %c0_i32_1 = arith.constant 0 : i32
    %c0_i32_2 = arith.constant 0 : i32
    return %arg0, %c0_i32, %c0_i32_0, %c0_i32_1 : i32, i32, i32, i32
  }
}

</mosaic_0001>

<bundles_post_ra>
// kernel: tpu_custom_call.1
= control target key start
LH: loop header
LB: loop body
LE: loop exit
PB: predicated region body
PF: predicated region fallthrough
CT: control target
= control target key end

     0   :  { %13 = vsyncpa [#allocation5], 0  ;;  %s3410_s0 = inlined_call_operand.vmem [shape: bf16[2,16,16,4], index: 0, kind: input, shape index: {}]   ;;  %s3411_s1 = inlined_call_operand.vmem [shape: f32[1,4], index: 1, kind: input, shape index: {}]   ;;  %s3412_s2 = inlined_call_operand.vmem [shape: f32[1,4], index: 2, kind: input, shape index: {}]   ;;  %s3413_s3 = inlined_call_operand.vmem [shape: bf16[36,8], index: 3, kind: input, shape index: {}]   ;;  %s3414_s4 = inlined_call_operand.vmem [shape: f32[1,8], index: 4, kind: input, shape index: {}]   ;;  %s3415_s5 = inlined_call_operand.vmem [shape: f32[1,8], index: 5, kind: input, shape index: {}]   ;;  %s3416_s6 = inlined_call_operand.vmem [shape: bf16[72,8], index: 6, kind: input, shape index: {}]   ;;  %s3417_s7 = inlined_call_operand.vmem [shape: bf16[4,8], index: 7, kind: input, shape index: {}]   ;;  %s3418_s8 = inlined_call_operand.hbm [shape: bf16[2,8,8,8], index: 8, kind: output, shape index: {}]  }
   0x1   :  { %15 = vsyncpa [#allocation5 + $0x1], 0  ;;  %s2638_s27 = smov 0   ;;  %s2640_s28 = smov 0  }
   0x2   :  { %s2642_s29 = smov 0   ;;  %s2644_s30 = smov 0  }
   0x3 LB: > { %s2659_s9 = sadd.s32 4294967295, %s2577_s30   ;;  %s1954_s10 = sadd.s32 4294967294, %s2577_s30   ;;  %s2577_s30 = sphi %s2644_s30, %s3424_s30   ;;  %s2573_s29 = sphi %s2642_s29, %s3423_s29   ;;  %s2569_s28 = sphi %s2640_s28, %s3422_s28   ;;  %s2565_s27 = sphi %s2638_s27, %s3421_s27  }
   0x4   : > { %s2663_s11 = sadd.s32 1, %s2577_s30   ;;  %s201_s12 = sadd.s32 1, %s2573_s29 }
   0x5   : > { %s198_s13 = ssub.s32 %s2577_s30, %s2663_s11  ;;  %p211_p0 = scmp.ne.s32.totalorder %s2573_s29, %s2569_s28 }
   0x6   : > { %p199_p1 = scmp.eq.s32.totalorder %s198_s13, 0  ;;  %p212_p2 = scmp.eq.s32.totalorder %s2659_s9, 1 }
   0x7   : > { %p217_p3 = scmp.ne.s32.totalorder %s2569_s28, %s2565_s27  ;;  %p218_p4 = scmp.eq.s32.totalorder %s1954_s10, 1 }
   0x8   : > { %s2674_s14 = scalar_select %p199_p1, %s2573_s29, %s201_s12  }
   0x9   : > { %p2676_p5 = por %p212_p2, %p211_p0  ;;  %p2680_p6 = por %p218_p4, %p217_p3 }
   0xa   : > { %p1957_p7 = scmp.ge.s32.totalorder %s2577_s30, 1  ;;  %p265_p8 = scmp.lt.s32.totalorder %s2577_s30, 3 }
   0xc   : > { %p266_p9 = pnand %p1957_p7, %p265_p8 }
   0xd   : > { %p299_p10 = scmp.lt.s32.totalorder (!%p266_p9), %s2659_s9, 1  ;;  %s2580_s26 = smov (!%p266_p9), 8  }
   0xe   : > { %269 = sbr.rel (%p266_p9) target bundleno = 824 (0x338), region = 52  ;;  %s2581_s10 = smov (!%p266_p9), 4  }
   0xf   : > { %s2582_s12 = smov (!%p266_p9), 12   ;;  %s2583_s13 = smov (!%p266_p9), 16  }
  0x10   : > { %s2587_s19 = smov (!%p266_p9), 32   ;;  %s2588_s20 = smov (!%p266_p9), 40  }
  0x11   : > { %s2589_s25 = smov (!%p266_p9), 48   ;;  %s2591_s22 = smov (!%p266_p9), 64  }
  0x13   : > { %vm479_vm0 = vcmask 31744   ;;  %vm482_vm1 = vcmask 25600   ;;  %s2688_s17 = scalar_select %p299_p10, %s2659_s9, 1  ;;  %v2579_v0 = vmov 0.0   ;;  %v2801_v1 = vld [vmem:[%s3411_s1] ss:$0 sm:$0xff] }
  0x14   : > { %480 = vst.msk [vmem:[#allocation2] sm:$0xff] %vm479_vm0, %v2579_v0  ;;  %481 = vst.msk [vmem:[#allocation2 + $0x8] sm:$0xff] %vm479_vm0, %v2579_v0  ;;  %v2811_v11 = vld [vmem:[%s3412_s2] ss:$0 sm:$0xff]  ;;  %vm974_vm2 = vcmask 64512   ;;  %vm1074_vm3 = vcmask 1041408  }
  0x15   : > { %483 = vst.msk [vmem:[#allocation2 + $0x10] sm:$0x3] %vm482_vm1, %v2579_v0  ;;  %489 = vst.msk [vmem:[#allocation2 + $0x40] sm:$0x3] %vm482_vm1, %v2579_v0  ;;  %s1990_s18 = sshll.u32 %s2688_s17, 7  ;;  %s2584_s17 = smov 20  }
  0x16   : > { %487 = vst.msk [vmem:[#allocation2 + $0x30] sm:$0xff] %vm479_vm0, %v2579_v0  ;;  %488 = vst.msk [vmem:[#allocation2 + $0x38] sm:$0xff] %vm479_vm0, %v2579_v0  ;;  %s2796_s21 = scalar_lea.vmem %s3410_s0, %s1990_s18  ;;  %s2585_s18 = smov 24   ;;  %vm983_vm4 = vcmask 97280   ;;  %vm992_vm5 = vcmask 130048   ;;  %vm1001_vm6 = vcmask 162816  }
  0x17   : > { %484 = vst.msk [vmem:[#allocation2 + $0x18] sm:$0xff] %vm479_vm0, %v2579_v0  ;;  %485 = vst.msk [vmem:[#allocation2 + $0x20] sm:$0xff] %vm479_vm0, %v2579_v0  ;;  %v2056_v2 = vld [vmem:[%s2796_s21 + $0x8] sm:$0xff]   ;;  %v2058_v3 = vld [vmem:[%s2796_s21 + $0x18] sm:$0xff]   ;;  %vm1010_vm7 = vcmask 195584   ;;  %vm1019_vm8 = vcmask 228352  }
  0x18   : > { %486 = vst.msk [vmem:[#allocation2 + $0x28] sm:$0x3] %vm482_vm1, %v2579_v0  ;;  %492 = vst.msk [vmem:[#allocation2 + $0x58] sm:$0x3] %vm482_vm1, %v2579_v0  ;;  %v2060_v4 = vld [vmem:[%s2796_s21 + $0x28] sm:$0xff]   ;;  %v1998_v5 = vunpack.c.l.bf16 %v2056_v2  ;;  %v1999_v6 = vunpack.c.h.bf16 %v2056_v2  ;;  %v2006_v7 = vunpack.c.l.bf16 %v2058_v3  ;;  %v2007_v8 = vunpack.c.h.bf16 %v2058_v3  ;;  %v2059_v9 = vld [vmem:[%s2796_s21 + $0x20] sm:$0xff]  }
  0x19   : > { %490 = vst.msk [vmem:[#allocation2 + $0x48] sm:$0xff] %vm479_vm0, %v2579_v0  ;;  %491 = vst.msk [vmem:[#allocation2 + $0x50] sm:$0xff] %vm479_vm0, %v2579_v0  ;;  %v2061_v10 = vld [vmem:[%s2796_s21 + $0x30] sm:$0xff]   ;;  %v2014_v12 = vunpack.c.l.bf16 %v2060_v4  ;;  %v2015_v13 = vunpack.c.h.bf16 %v2060_v4  ;;  %v2010_v14 = vunpack.c.l.bf16 %v2059_v9  ;;  %v2011_v15 = vunpack.c.h.bf16 %v2059_v9  ;;  %v1993_v28 = vld [vmem:[%s2796_s21] sm:$0xff]  }
  0x1a   : > { %493 = vst.msk [vmem:[#allocation2 + $0x60] sm:$0xff] %vm479_vm0, %v2579_v0  ;;  %494 = vst.msk [vmem:[#allocation2 + $0x68] sm:$0xff] %vm479_vm0, %v2579_v0  ;;  %v379_v16 = vmul.f32 %v1998_v5, %v2801_v1  ;;  %v380_v17 = vmul.f32 %v1999_v6, %v2801_v1  ;;  %v383_v18 = vmul.f32 %v2006_v7, %v2801_v1  ;;  %v2018_v22 = vunpack.c.l.bf16 %v2061_v10  ;;  %v2057_v33 = vld [vmem:[%s2796_s21 + $0x10] sm:$0xff]   ;;  %v2062_v50 = vld [vmem:[%s2796_s21 + $0x38] sm:$0xff]  }
  0x1b   : > { %495 = vst.msk [vmem:[#allocation2 + $0x70] sm:$0x3] %vm482_vm1, %v2579_v0  ;;  %498 = vst.msk [vmem:[#allocation2 + $0x88] sm:$0x3] %vm482_vm1, %v2579_v0  ;;  %v384_v19 = vmul.f32 %v2007_v8, %v2801_v1  ;;  %v387_v20 = vmul.f32 %v2014_v12, %v2801_v1  ;;  %v388_v21 = vmul.f32 %v2015_v13, %v2801_v1  ;;  %v2019_v23 = vunpack.c.h.bf16 %v2061_v10  ;;  %v2064_v55 = vld [vmem:[%s2796_s21 + $0x48] sm:$0xff]   ;;  %v2066_v2 = vld [vmem:[%s2796_s21 + $0x58] sm:$0xff]  }
  0x1c   : > { %496 = vst.msk [vmem:[#allocation2 + $0x78] sm:$0xff] %vm479_vm0, %v2579_v0  ;;  %497 = vst.msk [vmem:[#allocation2 + $0x80] sm:$0xff] %vm479_vm0, %v2579_v0  ;;  %v417_v24 = vadd.f32 %v2811_v11, %v379_v16  ;;  %v418_v25 = vadd.f32 %v2811_v11, %v380_v17  ;;  %v421_v26 = vadd.f32 %v2811_v11, %v383_v18  ;;  %v1994_v44 = vunpack.c.l.bf16 %v1993_v28  ;;  %v600_v3 = vld [vmem:[#allocation2 + $0x2] ss:$2 sm:$0xff]  ;;  %v584_v4 = vld [vmem:[#allocation2 + $0x1] ss:$2 sm:$0xff] }
  0x1d   : > { %499 = vst.msk [vmem:[#allocation2 + $0x90] sm:$0xff] %vm479_vm0, %v2579_v0  ;;  %500 = vst.msk [vmem:[#allocation2 + $0x98] sm:$0xff] %vm479_vm0, %v2579_v0  ;;  %v422_v27 = vadd.f32 %v2811_v11, %v384_v19  ;;  %v425_v29 = vadd.f32 %v2811_v11, %v387_v20  ;;  %v426_v30 = vadd.f32 %v2811_v11, %v388_v21  ;;  %v1995_v45 = vunpack.c.h.bf16 %v1993_v28 }
  0x1e   : > { %501 = vst.msk [vmem:[#allocation2 + $0xa0] sm:$0x3] %vm482_vm1, %v2579_v0  ;;  %504 = vst.msk [vmem:[#allocation2 + $0xb8] sm:$0x3] %vm482_vm1, %v2579_v0  ;;  %v385_v31 = vmul.f32 %v2010_v14, %v2801_v1  ;;  %v386_v32 = vmul.f32 %v2011_v15, %v2801_v1  ;;  %v449_v34 = vmax.f32 %v417_v24, 0.0  ;;  %v450_v35 = vmax.f32 %v418_v25, 0.0 }
  0x1f   : > { %502 = vst.msk [vmem:[#allocation2 + $0xa8] sm:$0xff] %vm479_vm0, %v2579_v0  ;;  %503 = vst.msk [vmem:[#allocation2 + $0xb0] sm:$0xff] %vm479_vm0, %v2579_v0  ;;  %v453_v36 = vmax.f32 %v421_v26, 0.0  ;;  %v454_v37 = vmax.f32 %v422_v27, 0.0  ;;  %v457_v38 = vmax.f32 %v425_v29, 0.0  ;;  %v458_v39 = vmax.f32 %v426_v30, 0.0 }
  0x20   : > { %505 = vst.msk [vmem:[#allocation2 + $0xc0] sm:$0xff] %vm479_vm0, %v2579_v0  ;;  %506 = vst.msk [vmem:[#allocation2 + $0xc8] sm:$0xff] %vm479_vm0, %v2579_v0  ;;  %v389_v40 = vmul.f32 %v2018_v22, %v2801_v1  ;;  %v390_v41 = vmul.f32 %v2019_v23, %v2801_v1  ;;  %v423_v42 = vadd.f32 %v2811_v11, %v385_v31  ;;  %v2002_v48 = vunpack.c.l.bf16 %v2057_v33  ;;  %v2068_v14 = vld [vmem:[%s2796_s21 + $0x68] sm:$0xff]  }
  0x21   : > { %507 = vst.msk [vmem:[#allocation2 + $0xd0] sm:$0x3] %vm482_vm1, %v2579_v0  ;;  %510 = vst.msk [vmem:[#allocation2 + $0xe8] sm:$0x3] %vm482_vm1, %v2579_v0  ;;  %v424_v43 = vadd.f32 %v2811_v11, %v386_v32  ;;  %v2003_v49 = vunpack.c.h.bf16 %v2057_v33  ;;  %v377_v53 = vmul.f32 %v1994_v44, %v2801_v1  ;;  %v378_v54 = vmul.f32 %v1995_v45, %v2801_v1  ;;  %v2067_v33 = vld [vmem:[%s2796_s21 + $0x60] sm:$0xff]  }
  0x22   : > { %508 = vst.msk [vmem:[#allocation2 + $0xd8] sm:$0xff] %vm479_vm0, %v2579_v0  ;;  %509 = vst.msk [vmem:[#allocation2 + $0xe0] sm:$0xff] %vm479_vm0, %v2579_v0  ;;  %v427_v46 = vadd.f32 %v2811_v11, %v389_v40  ;;  %v428_v47 = vadd.f32 %v2811_v11, %v390_v41  ;;  %v455_v51 = vmax.f32 %v423_v42, 0.0  ;;  %v381_v58 = vmul.f32 %v2002_v48, %v2801_v1 }
  0x23   : > { %511 = vst.msk [vmem:[#allocation2 + $0xf0] sm:$0xff] %vm479_vm0, %v2579_v0  ;;  %512 = vst.msk [vmem:[#allocation2 + $0xf8] sm:$0xff] %vm479_vm0, %v2579_v0  ;;  %v456_v52 = vmax.f32 %v424_v43, 0.0  ;;  %v382_v59 = vmul.f32 %v2003_v49, %v2801_v1  ;;  %v415_v60 = vadd.f32 %v2811_v11, %v377_v53  ;;  %v416_v61 = vadd.f32 %v2811_v11, %v378_v54 }
  0x24   : > { %513 = vst.msk [vmem:[#allocation2 + $0x100] sm:$0x3] %vm482_vm1, %v2579_v0  ;;  %516 = vst.msk [vmem:[#allocation2 + $0x118] sm:$0x3] %vm482_vm1, %v2579_v0  ;;  %v459_v56 = vmax.f32 %v427_v46, 0.0  ;;  %v460_v57 = vmax.f32 %v428_v47, 0.0  ;;  %v2022_v62 = vunpack.c.l.bf16 %v2062_v50  ;;  %v2023_v63 = vunpack.c.h.bf16 %v2062_v50 }
  0x25   : > { %514 = vst.msk [vmem:[#allocation2 + $0x108] sm:$0xff] %vm479_vm0, %v2579_v0  ;;  %515 = vst.msk [vmem:[#allocation2 + $0x110] sm:$0xff] %vm479_vm0, %v2579_v0  ;;  %v419_v5 = vadd.f32 %v2811_v11, %v381_v58  ;;  %v420_v6 = vadd.f32 %v2811_v11, %v382_v59  ;;  %v2030_v7 = vunpack.c.l.bf16 %v2064_v55  ;;  %v2031_v8 = vunpack.c.h.bf16 %v2064_v55 }
  0x26   : > { %517 = vst.msk [vmem:[#allocation2 + $0x120] sm:$0xff] %vm479_vm0, %v2579_v0  ;;  %518 = vst.msk [vmem:[#allocation2 + $0x128] sm:$0xff] %vm479_vm0, %v2579_v0  ;;  %v447_v9 = vmax.f32 %v415_v60, 0.0  ;;  %v448_v10 = vmax.f32 %v416_v61, 0.0  ;;  %v391_v12 = vmul.f32 %v2022_v62, %v2801_v1  ;;  %v392_v13 = vmul.f32 %v2023_v63, %v2801_v1  ;;  %v2063_v63 = vld [vmem:[%s2796_s21 + $0x40] sm:$0xff]  }
  0x27   : > { %519 = vst.msk [vmem:[#allocation2 + $0x130] sm:$0x3] %vm482_vm1, %v2579_v0  ;;  %522 = vst.msk [vmem:[#allocation2 + $0x148] sm:$0x3] %vm482_vm1, %v2579_v0  ;;  %v395_v18 = vmul.f32 %v2030_v7, %v2801_v1  ;;  %v396_v19 = vmul.f32 %v2031_v8, %v2801_v1  ;;  %v2038_v20 = vunpack.c.l.bf16 %v2066_v2  ;;  %v2039_v21 = vunpack.c.h.bf16 %v2066_v2 }
  0x28   : > { %520 = vst.msk [vmem:[#allocation2 + $0x138] sm:$0xff] %vm479_vm0, %v2579_v0  ;;  %521 = vst.msk [vmem:[#allocation2 + $0x140] sm:$0xff] %vm479_vm0, %v2579_v0  ;;  %v429_v27 = vadd.f32 %v2811_v11, %v391_v12  ;;  %v430_v28 = vadd.f32 %v2811_v11, %v392_v13  ;;  %v451_v31 = vmax.f32 %v419_v5, 0.0  ;;  %v452_v32 = vmax.f32 %v420_v6, 0.0 }
  0x29   : > { %523 = vst.msk [vmem:[#allocation2 + $0x150] sm:$0xff] %vm479_vm0, %v2579_v0  ;;  %524 = vst.msk [vmem:[#allocation2 + $0x158] sm:$0xff] %vm479_vm0, %v2579_v0  ;;  %v2046_v40 = vunpack.c.l.bf16 %v2068_v14  ;;  %v2047_v41 = vunpack.c.h.bf16 %v2068_v14  ;;  %v399_v42 = vmul.f32 %v2038_v20, %v2801_v1  ;;  %v400_v46 = vmul.f32 %v2039_v21, %v2801_v1 }
  0x2a   : > { %525 = vst.msk [vmem:[#allocation2 + $0x160] sm:$0x3] %vm482_vm1, %v2579_v0  ;;  %528 = vst.msk [vmem:[#allocation2 + $0x178] sm:$0x3] %vm482_vm1, %v2579_v0  ;;  %v2042_v47 = vunpack.c.l.bf16 %v2067_v33  ;;  %v2043_v48 = vunpack.c.h.bf16 %v2067_v33  ;;  %vm1028_vm9 = vcmask 261120   ;;  %vm1061_vm10 = vcmask 293888  }
  0x2b   : > { %526 = vst.msk [vmem:[#allocation2 + $0x168] sm:$0xff] %vm479_vm0, %v2579_v0  ;;  %527 = vst.msk [vmem:[#allocation2 + $0x170] sm:$0xff] %vm479_vm0, %v2579_v0  ;;  %v403_v54 = vmul.f32 %v2046_v40, %v2801_v1  ;;  %v404_v55 = vmul.f32 %v2047_v41, %v2801_v1  ;;  %vm1182_vm11 = vcmask 58368   ;;  %vm1746_vm12 = vcmask 1043456  }
  0x2c   : > { %529 = vst.msk [vmem:[#allocation2 + $0x180] sm:$0xff] %vm479_vm0, %v2579_v0  ;;  %530 = vst.msk [vmem:[#allocation2 + $0x188] sm:$0xff] %vm479_vm0, %v2579_v0  ;;  %v401_v61 = vmul.f32 %v2042_v47, %v2801_v1  ;;  %v402_v62 = vmul.f32 %v2043_v48, %v2801_v1  ;;  %vm1572_vm13 = vcmask 326656   ;;  %vm1581_vm14 = vcmask 392192  }
  0x2d   : > { %531 = vst.msk [vmem:[#allocation2 + $0x190] sm:$0x3] %vm482_vm1, %v2579_v0  ;;  %v441_v59 = vadd.f32 %v2811_v11, %v403_v54  ;;  %vm1590_vm15 = vcmask 457728   ;;  %vm1733_vm1 = vcmask 588800  }
  0x2e   : > { %538 = vst.msk [vmem:[#allocation2 + $0x31] sm:$0xff] %vm479_vm0, %v449_v34  ;;  %539 = vst.msk [vmem:[#allocation2 + $0x39] sm:$0xff] %vm479_vm0, %v450_v35  ;;  %v461_v34 = vmax.f32 %v429_v27, 0.0  ;;  %v462_v35 = vmax.f32 %v430_v28, 0.0  ;;  %v439_v14 = vadd.f32 %v2811_v11, %v401_v61 }
  0x2f   : > { %542 = vst.msk [vmem:[#allocation2 + $0x61] sm:$0xff] %vm479_vm0, %v453_v36  ;;  %543 = vst.msk [vmem:[#allocation2 + $0x69] sm:$0xff] %vm479_vm0, %v454_v37  ;;  %v433_v36 = vadd.f32 %v2811_v11, %v395_v18  ;;  %v434_v37 = vadd.f32 %v2811_v11, %v396_v19  ;;  %v2026_v18 = vunpack.c.l.bf16 %v2063_v63  ;;  %v2065_v19 = vld [vmem:[%s2796_s21 + $0x50] sm:$0xff]   ;;  %v473_v21 = vmax.f32 %v441_v59, 0.0 }
  0x30   : > { %546 = vst.msk [vmem:[#allocation2 + $0x91] sm:$0xff] %vm479_vm0, %v457_v38  ;;  %547 = vst.msk [vmem:[#allocation2 + $0x99] sm:$0xff] %vm479_vm0, %v458_v39  ;;  %v2069_v38 = vld [vmem:[%s2796_s21 + $0x70] sm:$0xff]   ;;  %v471_v28 = vmax.f32 %v439_v14, 0.0  ;;  %v2035_v33 = vunpack.c.h.bf16 %v2065_v19 }
  0x31   : > { %544 = vst.msk [vmem:[#allocation2 + $0x79] sm:$0xff] %vm479_vm0, %v455_v51  ;;  %545 = vst.msk [vmem:[#allocation2 + $0x81] sm:$0xff] %vm479_vm0, %v456_v52  ;;  %v2050_v50 = vunpack.c.l.bf16 %v2069_v38  ;;  %v465_v52 = vmax.f32 %v433_v36, 0.0  ;;  %v466_v53 = vmax.f32 %v434_v37, 0.0  ;;  %v2051_v60 = vunpack.c.h.bf16 %v2069_v38 }
  0x32   : > { %548 = vst.msk [vmem:[#allocation2 + $0xa9] sm:$0xff] %vm479_vm0, %v459_v56  ;;  %549 = vst.msk [vmem:[#allocation2 + $0xb1] sm:$0xff] %vm479_vm0, %v460_v57  ;;  %v437_v56 = vadd.f32 %v2811_v11, %v399_v42  ;;  %v438_v57 = vadd.f32 %v2811_v11, %v400_v46  ;;  %v393_v37 = vmul.f32 %v2026_v18, %v2801_v1 }
  0x33   : > { %536 = vst.msk [vmem:[#allocation2 + $0x19] sm:$0xff] %vm479_vm0, %v447_v9  ;;  %537 = vst.msk [vmem:[#allocation2 + $0x21] sm:$0xff] %vm479_vm0, %v448_v10  ;;  %v405_v7 = vmul.f32 %v2050_v50, %v2801_v1  ;;  %v406_v13 = vmul.f32 %v2051_v60, %v2801_v1 }
  0x34   : > { %540 = vst.msk [vmem:[#allocation2 + $0x49] sm:$0xff] %vm479_vm0, %v451_v31  ;;  %541 = vst.msk [vmem:[#allocation2 + $0x51] sm:$0xff] %vm479_vm0, %v452_v32  ;;  %v469_v5 = vmax.f32 %v437_v56, 0.0  ;;  %v470_v6 = vmax.f32 %v438_v57, 0.0  ;;  %v2027_v31 = vunpack.c.h.bf16 %v2063_v63  ;;  %v2034_v32 = vunpack.c.l.bf16 %v2065_v19  ;;  %v2510_v19 = vld [vmem:[%s3413_s3 + $0x8] sm:$0xff]  }
  0x35   : > { %v602_v15 = vld [vmem:[#allocation2 + $0x32] ss:$2 sm:$0xff]  ;;  %v586_v16 = vld [vmem:[#allocation2 + $0x31] ss:$2 sm:$0xff]  ;;  %550 = vst.msk [vmem:[#allocation2 + $0xc1] sm:$0xff] %vm479_vm0, %v461_v34  ;;  %551 = vst.msk [vmem:[#allocation2 + $0xc9] sm:$0xff] %vm479_vm0, %v462_v35  ;;  %v444_v27 = vadd.f32 %v2811_v11, %v406_v13  ;;  %v431_v46 = vadd.f32 %v2811_v11, %v393_v37 }
  0x36   : > { %v604_v17 = vld [vmem:[#allocation2 + $0x62] ss:$2 sm:$0xff]  ;;  %v2199_v22 = vpack.i.bf16 %v602_v15, %v600_v3  ;;  %v2189_v23 = vpack.i.bf16 %v586_v16, %v584_v4  ;;  %v588_v25 = vld [vmem:[#allocation2 + $0x61] ss:$2 sm:$0xff]  ;;  %554 = vst.msk [vmem:[#allocation2 + $0xf1] sm:$0xff] %vm479_vm0, %v465_v52  ;;  %555 = vst.msk [vmem:[#allocation2 + $0xf9] sm:$0xff] %vm479_vm0, %v466_v53  ;;  %v442_v4 = vadd.f32 %v2811_v11, %v404_v55 }
  0x37   : > { %v606_v24 = vld [vmem:[#allocation2 + $0x92] ss:$2 sm:$0xff]  ;;  %v590_v26 = vld [vmem:[#allocation2 + $0x91] ss:$2 sm:$0xff]  ;;  %v440_v15 = vadd.f32 %v2811_v11, %v402_v62  ;;  %558 = vst.msk [vmem:[#allocation2 + $0x121] sm:$0xff] %vm479_vm0, %v469_v5  ;;  %559 = vst.msk [vmem:[#allocation2 + $0x129] sm:$0xff] %vm479_vm0, %v470_v6  ;;  %v394_v41 = vmul.f32 %v2027_v31, %v2801_v1  ;;  %v397_v42 = vmul.f32 %v2034_v32, %v2801_v1 }
  0x38   : > { %v2204_v29 = vpack.i.bf16 %v606_v24, %v604_v17  ;;  %v2194_v30 = vpack.i.bf16 %v590_v26, %v588_v25  ;;  %2200 = vrot.lane.b32.xlu1 %v2199_v22, %s2580_s26  ;;  %2190 = vrot.lane.b32.xlu0 %v2189_v23, %s2581_s10  ;;  %v619_v39 = vld [vmem:[#allocation2 + $0x78] ss:$2 sm:$0xff]  ;;  %v2874_v44 = vld [vmem:[#allocation2 + $0x79] ss:$2 sm:$0xff]  ;;  %v443_v17 = vadd.f32 %v2811_v11, %v405_v7  ;;  %v474_v22 = vmax.f32 %v442_v4, 0.0 }
  0x39   : > { %v621_v43 = vld [vmem:[#allocation2 + $0xa8] ss:$2 sm:$0xff]  ;;  %v2876_v45 = vld [vmem:[#allocation2 + $0xa9] ss:$2 sm:$0xff]  ;;  %v2070_v23 = vld [vmem:[%s2796_s21 + $0x78] sm:$0xff]   ;;  %562 = vst.msk [vmem:[#allocation2 + $0x151] sm:$0xff] %vm479_vm0, %v473_v21  ;;  %v432_v53 = vadd.f32 %v2811_v11, %v394_v41  ;;  %v435_v54 = vadd.f32 %v2811_v11, %v397_v42 }
  0x3a   : > { %v1622_v49 = vpack.c.bf16 %v2876_v45, %v2874_v44  ;;  %v2214_v51 = vpack.i.bf16 %v621_v43, %v619_v39  ;;  %v615_v58 = vld [vmem:[#allocation2 + $0x18] ss:$2 sm:$0xff]  ;;  %v2224_v9 = vpack.i.bf16 %v2876_v45, %v2874_v44  ;;  %v2900_v10 = vld [vmem:[#allocation2 + $0x19] ss:$2 sm:$0xff]  ;;  %563 = vst.msk [vmem:[#allocation2 + $0x159] sm:$0xff] %vm479_vm0, %v474_v22  ;;  %v476_v36 = vmax.f32 %v444_v27, 0.0 }
  0x3b   : > { %v651_v2 = vld [vmem:[#allocation2 + $0x7a] ss:$2 sm:$0xff]  ;;  %v653_v3 = vld [vmem:[#allocation2 + $0xaa] ss:$2 sm:$0xff]  ;;  %v2902_v12 = vld [vmem:[#allocation2 + $0x49] ss:$2 sm:$0xff]  ;;  %v2054_v38 = vunpack.c.l.bf16 %v2070_v23  ;;  %v2055_v39 = vunpack.c.h.bf16 %v2070_v23  ;;  %v398_v43 = vmul.f32 %v2035_v33, %v2801_v1 }
  0x3c   : > { %2205 = vrot.lane.b32.xlu1 %v2204_v29, %s2580_s26  ;;  %2195 = vrot.lane.b32.xlu0 %v2194_v30, %s2581_s10  ;;  %v617_v8 = vld [vmem:[#allocation2 + $0x48] ss:$2 sm:$0xff]  ;;  %v2234_v20 = vpack.i.bf16 %v653_v3, %v651_v2  ;;  %v2219_v24 = vpack.i.bf16 %v2902_v12, %v2900_v10  ;;  %v472_v29 = vmax.f32 %v440_v15, 0.0  ;;  %v475_v30 = vmax.f32 %v443_v17, 0.0  ;;  %560 = vst.msk [vmem:[#allocation2 + $0x139] sm:$0xff] %vm479_vm0, %v471_v28  ;;  %s2586_s21 = smov 28  }
  0x3d   : > { %v2209_v16 = vpack.i.bf16 %v617_v8, %v615_v58  ;;  %v647_v25 = vld [vmem:[#allocation2 + $0x1a] ss:$2 sm:$0xff]  ;;  %v649_v26 = vld [vmem:[#allocation2 + $0x4a] ss:$2 sm:$0xff]  ;;  %565 = vst.msk [vmem:[#allocation2 + $0x171] sm:$0xff] %vm479_vm0, %v476_v36  ;;  %v407_v47 = vmul.f32 %v2054_v38, %v2801_v1  ;;  %v408_v48 = vmul.f32 %v2055_v39, %v2801_v1  ;;  %v436_v57 = vadd.f32 %v2811_v11, %v398_v43 }
  0x3e   : > { %v667_v34 = vld [vmem:[#allocation2 + $0x90] ss:$2 sm:$0xff]  ;;  %v669_v35 = vld [vmem:[#allocation2 + $0xc0] ss:$2 sm:$0xff]  ;;  %561 = vst.msk [vmem:[#allocation2 + $0x141] sm:$0xff] %vm479_vm0, %v472_v29  ;;  %v2229_v40 = vpack.i.bf16 %v649_v26, %v647_v25  ;;  %564 = vst.msk [vmem:[#allocation2 + $0x169] sm:$0xff] %vm479_vm0, %v475_v30 }
  0x3f   : > { %v2244_v50 = vpack.i.bf16 %v669_v35, %v667_v34  ;;  %v665_v52 = vld [vmem:[#allocation2 + $0x60] ss:$2 sm:$0xff]  ;;  %v683_v55 = vld [vmem:[#allocation2 + $0x91] ss:$2 sm:$0xff]  ;;  %v685_v56 = vld [vmem:[#allocation2 + $0xc1] ss:$2 sm:$0xff]  ;;  %v445_v59 = vadd.f32 %v2811_v11, %v407_v47  ;;  %v446_v60 = vadd.f32 %v2811_v11, %v408_v48 }
  0x40   : > { %2215 = vrot.lane.b32.xlu1 %v2214_v51, %s2582_s12  ;;  %2210 = vrot.lane.b32.xlu0 %v2209_v16, %s2582_s12  ;;  %v663_v51 = vld [vmem:[#allocation2 + $0x30] ss:$2 sm:$0xff]  ;;  %v463_v58 = vmax.f32 %v431_v46, 0.0  ;;  %v464_v1 = vmax.f32 %v432_v53, 0.0  ;;  %v467_v61 = vmax.f32 %v435_v54, 0.0  ;;  %v468_v2 = vmax.f32 %v436_v57, 0.0 }
  0x41   : > { %v2239_v62 = vpack.i.bf16 %v665_v52, %v663_v51  ;;  %v679_v63 = vld [vmem:[#allocation2 + $0x31] ss:$2 sm:$0xff]  ;;  %v477_v3 = vmax.f32 %v445_v59, 0.0  ;;  %v2254_v4 = vpack.i.bf16 %v685_v56, %v683_v55  ;;  %v681_v5 = vld [vmem:[#allocation2 + $0x61] ss:$2 sm:$0xff]  ;;  %v478_v11 = vmax.f32 %v446_v60, 0.0 }
  0x42   : > { %552 = vst.msk [vmem:[#allocation2 + $0xd9] sm:$0xff] %vm479_vm0, %v463_v58  ;;  %v592_v6 = vld [vmem:[#allocation2 + $0xc1] ss:$2 sm:$0xff]  ;;  %v594_v7 = vld [vmem:[#allocation2 + $0xf1] ss:$2 sm:$0xff]  ;;  %553 = vst.msk [vmem:[#allocation2 + $0xe1] sm:$0xff] %vm479_vm0, %v464_v1  ;;  %v2249_v14 = vpack.i.bf16 %v681_v5, %v679_v63 }
  0x43   : > { %556 = vst.msk [vmem:[#allocation2 + $0x109] sm:$0xff] %vm479_vm0, %v467_v61  ;;  %557 = vst.msk [vmem:[#allocation2 + $0x111] sm:$0xff] %vm479_vm0, %v468_v2  ;;  %v2509_v8 = vld [vmem:[%s3413_s3 + $0x10] ss:$0 sps:$4 sm:$0x33]   ;;  %v2264_v16 = vpack.i.bf16 %v594_v7, %v592_v6  ;;  %v2511_v29 = vld [vmem:[%s3413_s3] sm:$0xff]  }
  0x44   : > { %2225 = vrot.lane.b32.xlu1 %v2224_v9, %s2583_s13  ;;  %2220 = vrot.lane.b32.xlu0 %v2219_v24, %s2583_s13  ;;  %566 = vst.msk [vmem:[#allocation2 + $0x181] sm:$0xff] %vm479_vm0, %v477_v3  ;;  %567 = vst.msk [vmem:[#allocation2 + $0x189] sm:$0xff] %vm479_vm0, %v478_v11  ;;  %v695_v17 = vld [vmem:[#allocation2 + $0x32] ss:$2 sm:$0xff]  ;;  %v697_v18 = vld [vmem:[#allocation2 + $0x62] ss:$2 sm:$0xff] }
  0x45   : > { %v2947_v9 = vld [vmem:[#allocation2 + $0x139] ss:$2 sm:$0xff]  ;;  %v2949_v13 = vld [vmem:[#allocation2 + $0x169] ss:$2 sm:$0xff]  ;;  %1181 = vst.msk [vmem:[#allocation3] sm:$0xff] %vm974_vm2, %v2579_v0  ;;  %1184 = vst.msk [vmem:[#allocation3 + $0x10] sm:$0xff] %vm974_vm2, %v2579_v0  ;;  %2134 = vmatprep.subr.msk.bf16.mxu0 %vm1074_vm3, %v2509_v8  ;;  %v2259_v23 = vpack.i.bf16 %v697_v18, %v695_v17 }
  0x46   : > { %1186 = vst.msk [vmem:[#allocation3 + $0x20] sm:$0xff] %vm974_vm2, %v2579_v0  ;;  %1188 = vst.msk [vmem:[#allocation3 + $0x30] sm:$0xff] %vm974_vm2, %v2579_v0  ;;  %v1624_v15 = vpack.c.bf16 %v2949_v13, %v2947_v9  ;;  %v598_v21 = vld [vmem:[#allocation2 + $0x151] ss:$2 sm:$0xff]  ;;  %v1076_v22 = vsel %vm1074_vm3, %v2509_v8, 0  ;;  %v2304_v46 = vpack.i.bf16 %v2949_v13, %v2947_v9 }
  0x47   : > { %1190 = vst.msk [vmem:[#allocation3 + $0x40] sm:$0xff] %vm974_vm2, %v2579_v0  ;;  %1192 = vst.msk [vmem:[#allocation3 + $0x50] sm:$0xff] %vm974_vm2, %v2579_v0  ;;  %v699_v24 = vld [vmem:[#allocation2 + $0x92] ss:$2 sm:$0xff]  ;;  %v701_v25 = vld [vmem:[#allocation2 + $0xc2] ss:$2 sm:$0xff]  ;;  %2093 = vmatpush3.bf16.msra.mxu0 %v1076_v22 }
  0x48   : > { %2235 = vrot.lane.b32.xlu1 %v2234_v20, %s2584_s17  ;;  %2230 = vrot.lane.b32.xlu0 %v2229_v40, %s2584_s17  ;;  %1194 = vst.msk [vmem:[#allocation3 + $0x60] sm:$0xff] %vm974_vm2, %v2579_v0  ;;  %1196 = vst.msk [vmem:[#allocation3 + $0x70] sm:$0xff] %vm974_vm2, %v2579_v0  ;;  %v596_v20 = vld [vmem:[#allocation2 + $0x121] ss:$2 sm:$0xff]  ;;  %v612_v30 = vld [vmem:[#allocation2 + $0x122] ss:$2 sm:$0xff]  ;;  %v2269_v33 = vpack.i.bf16 %v701_v25, %v699_v24 }
  0x49   : > { %1198 = vst.msk [vmem:[#allocation3 + $0x80] sm:$0xff] %vm974_vm2, %v2579_v0  ;;  %1200 = vst.msk [vmem:[#allocation3 + $0x90] sm:$0xff] %vm974_vm2, %v2579_v0  ;;  %v2274_v26 = vpack.i.bf16 %v598_v21, %v596_v20  ;;  %v2983_v27 = vld [vmem:[#allocation2 + $0xd9] ss:$2 sm:$0xff]  ;;  %2094 = vmatprep.subr.bf16.mxu0 %v2510_v19  ;;  %v614_v31 = vld [vmem:[#allocation2 + $0x152] ss:$2 sm:$0xff] }
  0x4a   : > { %v2985_v28 = vld [vmem:[#allocation2 + $0x109] ss:$2 sm:$0xff]  ;;  %v2284_v34 = vpack.i.bf16 %v614_v31, %v612_v30  ;;  %v608_v35 = vld [vmem:[#allocation2 + $0xc2] ss:$2 sm:$0xff]  ;;  %v610_v36 = vld [vmem:[#allocation2 + $0xf2] ss:$2 sm:$0xff] }
  0x4b   : > { %v1623_v32 = vpack.c.bf16 %v2985_v28, %v2983_v27  ;;  %2095 = vmatpush3.bf16.msra.mxu0 %v2510_v19  ;;  %v627_v37 = vld [vmem:[#allocation2 + $0x138] ss:$2 sm:$0xff]  ;;  %v629_v38 = vld [vmem:[#allocation2 + $0x168] ss:$2 sm:$0xff]  ;;  %v2279_v39 = vpack.i.bf16 %v610_v36, %v608_v35  ;;  %v691_v60 = vld [vmem:[#allocation2 + $0x151] ss:$2 sm:$0xff] }
  0x4c   : > { %2245 = vrot.lane.b32.xlu1 %v2244_v50, %s2585_s18  ;;  %2240 = vrot.lane.b32.xlu0 %v2239_v62, %s2585_s18  ;;  %v2294_v40 = vpack.i.bf16 %v629_v38, %v627_v37  ;;  %v623_v41 = vld [vmem:[#allocation2 + $0xd8] ss:$2 sm:$0xff]  ;;  %v625_v42 = vld [vmem:[#allocation2 + $0x108] ss:$2 sm:$0xff]  ;;  %v2299_v50 = vpack.i.bf16 %v2985_v28, %v2983_v27  ;;  %v693_v1 = vld [vmem:[#allocation2 + $0x181] ss:$2 sm:$0xff] }
  0x4d   : > { %2096 = vmatprep.subr.bf16.mxu0 %v2511_v29  ;;  %v2289_v43 = vpack.i.bf16 %v625_v42, %v623_v41  ;;  %v659_v47 = vld [vmem:[#allocation2 + $0x13a] ss:$2 sm:$0xff]  ;;  %v661_v48 = vld [vmem:[#allocation2 + $0x16a] ss:$2 sm:$0xff]  ;;  %v2334_v62 = vpack.i.bf16 %v693_v1, %v691_v60  ;;  %v687_v63 = vld [vmem:[#allocation2 + $0xf1] ss:$2 sm:$0xff] }
  0x4e   : > { %v2314_v51 = vpack.i.bf16 %v661_v48, %v659_v47  ;;  %v655_v52 = vld [vmem:[#allocation2 + $0xda] ss:$2 sm:$0xff]  ;;  %v657_v53 = vld [vmem:[#allocation2 + $0x10a] ss:$2 sm:$0xff]  ;;  %v689_v2 = vld [vmem:[#allocation2 + $0x121] ss:$2 sm:$0xff] }
  0x4f   : > { %2097 = vmatpush3.bf16.msra.mxu0 %v2511_v29  ;;  %v675_v54 = vld [vmem:[#allocation2 + $0x150] ss:$2 sm:$0xff]  ;;  %v677_v55 = vld [vmem:[#allocation2 + $0x180] ss:$2 sm:$0xff]  ;;  %v2309_v56 = vpack.i.bf16 %v657_v53, %v655_v52  ;;  %v2329_v5 = vpack.i.bf16 %v689_v2, %v687_v63  ;;  %1189 = vst.msk [vmem:[#allocation3 + $0x38] sm:$0x3] %vm1182_vm11, %v2579_v0 }
  0x50   : > { %2255 = vrot.lane.b32.xlu1 %v2254_v4, %s2586_s21  ;;  %2250 = vrot.lane.b32.xlu0 %v2249_v14, %s2586_s21  ;;  %v2324_v57 = vpack.i.bf16 %v677_v55, %v675_v54  ;;  %v671_v58 = vld [vmem:[#allocation2 + $0xf0] ss:$2 sm:$0xff]  ;;  %v673_v59 = vld [vmem:[#allocation2 + $0x120] ss:$2 sm:$0xff]  ;;  %1183 = vst.msk [vmem:[#allocation3 + $0x8] sm:$0x3] %vm1182_vm11, %v2579_v0 }
  0x51   : > { %v2319_v61 = vpack.i.bf16 %v673_v59, %v671_v58  ;;  %v707_v3 = vld [vmem:[#allocation2 + $0x152] ss:$2 sm:$0xff]  ;;  %v709_v4 = vld [vmem:[#allocation2 + $0x182] ss:$2 sm:$0xff]  ;;  %1185 = vst.msk [vmem:[#allocation3 + $0x18] sm:$0x3] %vm1182_vm11, %v2579_v0 }
  0x52   : > { %v2344_v6 = vpack.i.bf16 %v709_v4, %v707_v3  ;;  %v703_v7 = vld [vmem:[#allocation2 + $0xf2] ss:$2 sm:$0xff]  ;;  %v705_v11 = vld [vmem:[#allocation2 + $0x122] ss:$2 sm:$0xff]  ;;  %1187 = vst.msk [vmem:[#allocation3 + $0x28] sm:$0x3] %vm1182_vm11, %v2579_v0 }
  0x53   : > { %v2339_v8 = vpack.i.bf16 %v705_v11, %v703_v7  ;;  %v570_v29 = vld [vmem:[#allocation2 + $0x30] ss:$2 sm:$0xff]  ;;  %1191 = vst.msk [vmem:[#allocation3 + $0x48] sm:$0x3] %vm1182_vm11, %v2579_v0  ;;  %1193 = vst.msk [vmem:[#allocation3 + $0x58] sm:$0x3] %vm1182_vm11, %v2579_v0 }
  0x54   : > { %2265 = vrot.lane.b32.xlu1 %v2264_v16, %s2581_s10  ;;  %2260 = vrot.lane.b32.xlu0 %v2259_v23, %s2587_s19  ;;  %v574_v35 = vld [vmem:[#allocation2 + $0x90] ss:$2 sm:$0xff]  ;;  %1195 = vst.msk [vmem:[#allocation3 + $0x68] sm:$0x3] %vm1182_vm11, %v2579_v0  ;;  %1197 = vst.msk [vmem:[#allocation3 + $0x78] sm:$0x3] %vm1182_vm11, %v2579_v0 }
  0x55   : > { %1199 = vst.msk [vmem:[#allocation3 + $0x88] sm:$0x3] %vm1182_vm11, %v2579_v0  ;;  %1201 = vst.msk [vmem:[#allocation3 + $0x98] sm:$0x3] %vm1182_vm11, %v2579_v0  ;;  %v2514_v27 = vld [vmem:[%s3416_s6 + $0x10] sm:$0xff]  }
  0x58   : > { %2275 = vrot.lane.b32.xlu1 %v2274_v26, %s2581_s10  ;;  %2270 = vrot.lane.b32.xlu0 %v2269_v33, %s2587_s19  ;;  %v568_v26 = vld [vmem:[#allocation2] ss:$2 sm:$0xff] }
  0x5c   : > { %2285 = vrot.lane.b32.xlu1 %v2284_v34, %s2580_s26  ;;  %2280 = vrot.lane.b32.xlu0 %v2279_v39, %s2580_s26  ;;  %v572_v34 = vld [vmem:[#allocation2 + $0x60] ss:$2 sm:$0xff] }
  0x60   : > { %2295 = vrot.lane.b32.xlu1 %v2294_v40, %s2582_s12  ;;  %2290 = vrot.lane.b32.xlu0 %v2289_v43, %s2582_s12 }
  0x64   : > { %2305 = vrot.lane.b32.xlu1 %v2304_v46, %s2583_s13  ;;  %2300 = vrot.lane.b32.xlu0 %v2299_v50, %s2583_s13 }
  0x68   : > { %2315 = vrot.lane.b32.xlu1 %v2314_v51, %s2584_s17  ;;  %2310 = vrot.lane.b32.xlu0 %v2309_v56, %s2584_s17  ;;  %s2592_s17 = smov [#allocation4]  }
  0x6c   : > { %2325 = vrot.lane.b32.xlu1 %v2324_v57, %s2585_s18  ;;  %2320 = vrot.lane.b32.xlu0 %v2319_v61, %s2585_s18 }
  0x70   : > { %2335 = vrot.lane.b32.xlu1 %v2334_v62, %s2586_s21  ;;  %2330 = vrot.lane.b32.xlu0 %v2329_v5, %s2586_s21  ;;  %s2590_s21 = smov 56  }
  0x74   : > { %2345 = vrot.lane.b32.xlu1 %v2344_v6, %s2587_s19  ;;  %2340 = vrot.lane.b32.xlu0 %v2339_v8, %s2587_s19 }
  0xaa   : > { %v2201_v14 = vpop.permute.xlu1 %2200  ;;  %v2191_v16 = vpop.permute.xlu0 %2190 }
  0xab   : > { %v2193_v24 = vunpack.i.h.bf16 %v2191_v16  ;;  %v2192_v25 = vunpack.i.l.bf16 %v2191_v16  ;;  %v2203_v37 = vunpack.i.h.bf16 %v2201_v14  ;;  %v2202_v38 = vunpack.i.l.bf16 %v2201_v14 }
  0xad   : > { %v966_v39 = vsel %vm479_vm0, %v568_v26, %v2192_v25  ;;  %v967_v40 = vsel %vm479_vm0, %v570_v29, %v2193_v24 }
  0xae   : > { %v2206_v17 = vpop.permute.xlu1 %2205  ;;  %v2196_v18 = vpop.permute.xlu0 %2195  ;;  %v975_v52 = vsel %vm974_vm2, %v966_v39, %v2202_v38  ;;  %v976_v53 = vsel %vm974_vm2, %v967_v40, %v2203_v37 }
  0xaf   : > { %v2198_v30 = vunpack.i.h.bf16 %v2196_v18  ;;  %v2197_v31 = vunpack.i.l.bf16 %v2196_v18  ;;  %v2208_v41 = vunpack.i.h.bf16 %v2206_v17  ;;  %v2207_v42 = vunpack.i.l.bf16 %v2206_v17 }
  0xb1   : > { %v969_v43 = vsel %vm479_vm0, %v574_v35, %v2198_v30  ;;  %v968_v46 = vsel %vm479_vm0, %v572_v34, %v2197_v31 }
  0xb2   : > { %v2216_v19 = vpop.permute.xlu1 %2215  ;;  %v2211_v20 = vpop.permute.xlu0 %2210  ;;  %v977_v56 = vsel %vm974_vm2, %v968_v46, %v2207_v42  ;;  %v978_v57 = vsel %vm974_vm2, %v969_v43, %v2208_v41 }
  0xb3   : > { %v2218_v47 = vunpack.i.h.bf16 %v2216_v19  ;;  %v2217_v48 = vunpack.i.l.bf16 %v2216_v19  ;;  %v2213_v54 = vunpack.i.h.bf16 %v2211_v20  ;;  %v2212_v55 = vunpack.i.l.bf16 %v2211_v20 }
  0xb5   : > { %v986_v60 = vsel %vm983_vm4, %v977_v56, %v2217_v48  ;;  %v987_v1 = vsel %vm983_vm4, %v978_v57, %v2218_v47  ;;  %v985_v7 = vsel %vm983_vm4, %v976_v53, %v2213_v54  ;;  %v984_v11 = vsel %vm983_vm4, %v975_v52, %v2212_v55 }
  0xb6   : > { %v3013_v21 = vpop.permute.xlu1 %2225  ;;  %v2221_v22 = vpop.permute.xlu0 %2220 }
  0xb7   : > { %v2223_v58 = vunpack.i.h.bf16 %v2221_v22  ;;  %v2222_v59 = vunpack.i.l.bf16 %v2221_v22  ;;  %v2228_v2 = vunpack.i.h.bf16 %v3013_v21  ;;  %v2227_v3 = vunpack.i.l.bf16 %v3013_v21 }
  0xb9   : > { %v993_v16 = vsel %vm992_vm5, %v984_v11, %v2222_v59  ;;  %v994_v17 = vsel %vm992_vm5, %v985_v7, %v2223_v58  ;;  %v995_v38 = vsel %vm992_vm5, %v986_v60, %v2227_v3  ;;  %v996_v39 = vsel %vm992_vm5, %v987_v1, %v2228_v2  ;;  %v580_v3 = vld [vmem:[#allocation2 + $0x120] ss:$2 sm:$0xff] }
  0xba   : > { %v3015_v23 = vpop.permute.xlu1 %2235  ;;  %v2231_v33 = vpop.permute.xlu0 %2230 }
  0xbb   : > { %v2233_v61 = vunpack.i.h.bf16 %v2231_v33  ;;  %v2232_v62 = vunpack.i.l.bf16 %v2231_v33  ;;  %v2238_v18 = vunpack.i.h.bf16 %v3015_v23  ;;  %v2237_v19 = vunpack.i.l.bf16 %v3015_v23 }
  0xbd   : > { %v1002_v20 = vsel %vm1001_vm6, %v993_v16, %v2232_v62  ;;  %v1003_v21 = vsel %vm1001_vm6, %v994_v17, %v2233_v61  ;;  %v1004_v41 = vsel %vm1001_vm6, %v995_v38, %v2237_v19  ;;  %v1005_v42 = vsel %vm1001_vm6, %v996_v39, %v2238_v18  ;;  %v578_v16 = vld [vmem:[#allocation2 + $0xf0] ss:$2 sm:$0xff] }
  0xbe   : > { %v3017_v36 = vpop.permute.xlu1 %2245  ;;  %v2241_v50 = vpop.permute.xlu0 %2240 }
  0xbf   : > { %v2243_v4 = vunpack.i.h.bf16 %v2241_v50  ;;  %v2242_v5 = vunpack.i.l.bf16 %v2241_v50  ;;  %v2248_v22 = vunpack.i.h.bf16 %v3017_v36  ;;  %v2247_v24 = vunpack.i.l.bf16 %v3017_v36 }
  0xc1   : > { %v1011_v26 = vsel %vm1010_vm7, %v1002_v20, %v2242_v5  ;;  %v1012_v29 = vsel %vm1010_vm7, %v1003_v21, %v2243_v4  ;;  %v1013_v47 = vsel %vm1010_vm7, %v1004_v41, %v2247_v24  ;;  %v1014_v48 = vsel %vm1010_vm7, %v1005_v42, %v2248_v22  ;;  %v582_v4 = vld [vmem:[#allocation2 + $0x150] ss:$2 sm:$0xff] }
  0xc2   : > { %v2256_v51 = vpop.permute.xlu1 %2255  ;;  %v2251_v63 = vpop.permute.xlu0 %2250 }
  0xc3   : > { %v2253_v8 = vunpack.i.h.bf16 %v2251_v63  ;;  %v2252_v14 = vunpack.i.l.bf16 %v2251_v63  ;;  %v2258_v34 = vunpack.i.h.bf16 %v2256_v51  ;;  %v2257_v35 = vunpack.i.l.bf16 %v2256_v51 }
  0xc5   : > { %v1020_v23 = vsel %vm1019_vm8, %v1011_v26, %v2252_v14  ;;  %v1021_v37 = vsel %vm1019_vm8, %v1012_v29, %v2253_v8  ;;  %v1022_v53 = vsel %vm1019_vm8, %v1013_v47, %v2257_v35  ;;  %v1023_v54 = vsel %vm1019_vm8, %v1014_v48, %v2258_v34  ;;  %v576_v14 = vld [vmem:[#allocation2 + $0xc0] ss:$2 sm:$0xff] }
  0xc6   : > { %v3031_v6 = vpop.permute.xlu1 %2265  ;;  %v2261_v25 = vpop.permute.xlu0 %2260 }
  0xc7   : > { %v2263_v30 = vunpack.i.h.bf16 %v2261_v25  ;;  %v2262_v31 = vunpack.i.l.bf16 %v2261_v25  ;;  %v2268_v5 = vunpack.i.h.bf16 %v3031_v6  ;;  %v2267_v7 = vunpack.i.l.bf16 %v3031_v6 }
  0xc9   : > { %v1029_v36 = vsel %vm1028_vm9, %v1020_v23, %v2262_v31  ;;  %v1030_v40 = vsel %vm1028_vm9, %v1021_v37, %v2263_v30  ;;  %v971_v6 = vsel %vm479_vm0, %v578_v16, %v2268_v5 }
  0xca   : > { %v2276_v33 = vpop.permute.xlu1 %2275  ;;  %v2271_v43 = vpop.permute.xlu0 %2270  ;;  %v1037_v46 = vpack.c.bf16 %v1030_v40, %v1029_v36 }
  0xcb   : > { %v2273_v50 = vunpack.i.h.bf16 %v2271_v43  ;;  %v2272_v51 = vunpack.i.l.bf16 %v2271_v43  ;;  %v2278_v62 = vunpack.i.h.bf16 %v2276_v33  ;;  %v2277_v63 = vunpack.i.l.bf16 %v2276_v33 }
  0xcc   : > { %2098 = vmatprep.mubr.msk.bf16.mxu0 %vm1061_vm10, %v1037_v46  ;;  %v970_v33 = vsel %vm479_vm0, %v576_v14, %v2267_v7 }
  0xcd   : > { %v1032_v55 = vsel %vm1028_vm9, %v1023_v54, %v2273_v50  ;;  %v1031_v56 = vsel %vm1028_vm9, %v1022_v53, %v2272_v51  ;;  %v973_v20 = vsel %vm479_vm0, %v582_v4, %v2278_v62  ;;  %v972_v21 = vsel %vm479_vm0, %v580_v3, %v2277_v63 }
  0xce   : > { %v2286_v52 = vpop.permute.xlu1 %2285  ;;  %v1038_v57 = vpack.c.bf16 %v1032_v55, %v1031_v56  ;;  %v2281_v58 = vpop.permute.xlu0 %2280 }
  0xcf   : > { %v2288_v11 = vunpack.i.h.bf16 %v2286_v52  ;;  %v2287_v8 = vunpack.i.l.bf16 %v2286_v52  ;;  %v2283_v17 = vunpack.i.h.bf16 %v2281_v58  ;;  %v2282_v18 = vunpack.i.l.bf16 %v2281_v58 }
  0xd0   : > { %2099 = vmatmul.mubr.msk.bf16.vlgmr.msra.gmra.mxu0 %vm1061_vm10, %v1038_v57 }
  0xd1   : > { %v981_v34 = vsel %vm974_vm2, %v972_v21, %v2287_v8  ;;  %v982_v35 = vsel %vm974_vm2, %v973_v20, %v2288_v11  ;;  %v980_v23 = vsel %vm974_vm2, %v971_v6, %v2283_v17  ;;  %v979_v37 = vsel %vm974_vm2, %v970_v33, %v2282_v18 }
  0xd2   : > { %v2296_v59 = vpop.permute.xlu1 %2295  ;;  %v2291_v60 = vpop.permute.xlu0 %2290 }
  0xd3   : > { %v2298_v22 = vunpack.i.h.bf16 %v2296_v59  ;;  %v2297_v24 = vunpack.i.l.bf16 %v2296_v59  ;;  %v2293_v26 = vunpack.i.h.bf16 %v2291_v60  ;;  %v2292_v29 = vunpack.i.l.bf16 %v2291_v60 }
  0xd5   : > { %v990_v40 = vsel %vm983_vm4, %v981_v34, %v2297_v24  ;;  %v991_v41 = vsel %vm983_vm4, %v982_v35, %v2298_v22  ;;  %v988_v47 = vsel %vm983_vm4, %v979_v37, %v2292_v29  ;;  %v989_v48 = vsel %vm983_vm4, %v980_v23, %v2293_v26  ;;  %v3114_v35 = vld [vmem:[%s3414_s4] ss:$0 sm:$0xff] }
  0xd6   : > { %v2306_v1 = vpop.permute.xlu1 %2305  ;;  %v3061_v61 = vpop.permute.xlu0 %2300  ;;  %v3119_v37 = vld [vmem:[%s3415_s5] ss:$0 sm:$0xff] }
  0xd7   : > { %v2308_v30 = vunpack.i.h.bf16 %v2306_v1  ;;  %v2307_v31 = vunpack.i.l.bf16 %v2306_v1  ;;  %v2303_v52 = vunpack.i.h.bf16 %v3061_v61  ;;  %v2302_v53 = vunpack.i.l.bf16 %v3061_v61 }
  0xd9   : > { %v999_v50 = vsel %vm992_vm5, %v990_v40, %v2307_v31  ;;  %v1000_v51 = vsel %vm992_vm5, %v991_v41, %v2308_v30  ;;  %v997_v11 = vsel %vm992_vm5, %v988_v47, %v2302_v53  ;;  %v998_v8 = vsel %vm992_vm5, %v989_v48, %v2303_v52 }
  0xda   : > { %v2316_v2 = vpop.permute.xlu1 %2315  ;;  %v2311_v19 = vpop.permute.xlu0 %2310 }
  0xdb   : > { %v2318_v38 = vunpack.i.h.bf16 %v2316_v2  ;;  %v2317_v39 = vunpack.i.l.bf16 %v2316_v2  ;;  %v2313_v58 = vunpack.i.h.bf16 %v2311_v19  ;;  %v2312_v59 = vunpack.i.l.bf16 %v2311_v19 }
  0xdd   : > { %v1008_v56 = vsel %vm1001_vm6, %v999_v50, %v2317_v39  ;;  %v1009_v57 = vsel %vm1001_vm6, %v1000_v51, %v2318_v38  ;;  %v1006_v17 = vsel %vm1001_vm6, %v997_v11, %v2312_v59  ;;  %v1007_v18 = vsel %vm1001_vm6, %v998_v8, %v2313_v58 }
  0xde   : > { %v2326_v25 = vpop.permute.xlu1 %2325  ;;  %v2321_v36 = vpop.permute.xlu0 %2320  ;;  %v1621_v8 = vpack.c.bf16 %v2902_v12, %v2900_v10  ;;  %v2513_v12 = vld [vmem:[%s3416_s6 + $0x18] sm:$0xff]  }
  0xdf   : > { %v2328_v42 = vunpack.i.h.bf16 %v2326_v25  ;;  %v2327_v43 = vunpack.i.l.bf16 %v2326_v25  ;;  %v2323_v63 = vunpack.i.h.bf16 %v2321_v36  ;;  %v2322_v2 = vunpack.i.l.bf16 %v2321_v36 }
  0xe0   : > { %2108 = vmatprep.mubr.msk.bf16.mxu1 %vm479_vm0, %v1621_v8 }
  0xe1   : > { %v1017_v1 = vsel %vm1010_vm7, %v1008_v56, %v2327_v43  ;;  %v1018_v62 = vsel %vm1010_vm7, %v1009_v57, %v2328_v42  ;;  %v1015_v22 = vsel %vm1010_vm7, %v1006_v17, %v2322_v2  ;;  %v1016_v24 = vsel %vm1010_vm7, %v1007_v18, %v2323_v63  ;;  %v1227_v57 = vld [vmem:[#allocation3 + $0x2] sm:$0xff]  ;;  %v1625_v2 = vld [vmem:[%s3417_s7] sm:$0x3] }
  0xe2   : > { %v2336_v46 = vpop.permute.xlu1 %2335  ;;  %v2331_v60 = vpop.permute.xlu0 %2330  ;;  %2135 = vmatprep.subr.msk.bf16.mxu1 %vm1074_vm3, %v1625_v2 }
  0xe3   : > { %v2338_v54 = vunpack.i.h.bf16 %v2336_v46  ;;  %v2337_v55 = vunpack.i.l.bf16 %v2336_v46  ;;  %v2333_v4 = vunpack.i.h.bf16 %v2331_v60  ;;  %v2332_v5 = vunpack.i.l.bf16 %v2331_v60 }
  0xe5   : > { %v1026_v14 = vsel %vm1019_vm8, %v1017_v1, %v2337_v55  ;;  %v1027_v16 = vsel %vm1019_vm8, %v1018_v62, %v2338_v54  ;;  %v1024_v29 = vsel %vm1019_vm8, %v1015_v22, %v2332_v5  ;;  %v1025_v30 = vsel %vm1019_vm8, %v1016_v24, %v2333_v4  ;;  %v1219_v54 = vld [vmem:[#allocation3 + $0x1] sm:$0xff] }
  0xe6   : > { %v2346_v3 = vpop.permute.xlu1 %2345  ;;  %v2341_v21 = vpop.permute.xlu0 %2340  ;;  %v1639_v5 = vsel %vm1074_vm3, %v1625_v2, 0 }
  0xe7   : > { %v2348_v7 = vunpack.i.h.bf16 %v2346_v3  ;;  %v2347_v61 = vunpack.i.l.bf16 %v2346_v3  ;;  %v2343_v25 = vunpack.i.h.bf16 %v2341_v21  ;;  %v2342_v26 = vunpack.i.l.bf16 %v2341_v21  ;;  %2107 = vmatpush3.bf16.msra.mxu1 %v1639_v5 }
  0xe9   : > { %v1035_v19 = vsel %vm1028_vm9, %v1026_v14, %v2347_v61  ;;  %v1036_v20 = vsel %vm1028_vm9, %v1027_v16, %v2348_v7  ;;  %v1033_v6 = vsel %vm1028_vm9, %v1024_v29, %v2342_v26  ;;  %v1034_v33 = vsel %vm1028_vm9, %v1025_v30, %v2343_v25  ;;  %v2512_v14 = vld [vmem:[%s3416_s6 + $0x20] ss:$0 sps:$4 sm:$0xff]  }
  0xea   : > { %v1040_v31 = vpack.c.bf16 %v1036_v20, %v1035_v19  ;;  %v1039_v34 = vpack.c.bf16 %v1034_v33, %v1033_v6  ;;  %2136 = vmatprep.subr.msk.bf16.mxu1 %vm1746_vm12, %v2512_v14  ;;  %v1748_v19 = vsel %vm1746_vm12, %v2512_v14, 0  ;;  %2109 = vmatmul.mubr.msk.bf16.vlgmr.msra.gmra.mxu1 %vm479_vm0, %v1622_v49  ;;  %v1283_v14 = vld [vmem:[#allocation3 + $0x92] sm:$0xff] }
  0xeb   : > { %2117 = vmatpush3.bf16.msra.mxu1 %v1748_v19  ;;  %2112 = vmatprep.mubr.msk.bf16.mxu1 %vm479_vm0, %v1623_v32 }
  0xec   : > { %2102 = vmatprep.mubr.msk.bf16.mxu0 %vm1061_vm10, %v1039_v34  ;;  %2118 = vmatprep.subr.bf16.mxu1 %v2513_v12 }
  0xed   : > { %2103 = vmatmul.mubr.msk.bf16.gmra.mxu0 %vm1061_vm10, %v1040_v31 }
  0xef   : > { %2119 = vmatpush3.bf16.msra.mxu1 %v2513_v12 }
  0xf0   : > { %2120 = vmatprep.subr.bf16.mxu1 %v2514_v27 }
  0xf2   : > { %2113 = vmatmul.mubr.msk.bf16.gmra.mxu1 %vm479_vm0, %v1624_v15  ;;  %vm1599_vm0 = vcmask 523264  }
  0xf3   : > { %2121 = vmatpush3.bf16.msra.mxu1 %v2514_v27 }
 0x190   : > { %v2100_v23 = vpop.f32.mrf.mxu0 }
 0x191   : > { %v1152_v38 = vmul.f32 %v2100_v23, %v3114_v35 }
 0x192   : > { %v1112_v39 = vpop.f32.mrf.mxu0 }
 0x193   : > { %v1167_v36 = vadd.f32 %v3119_v37, %v1152_v38  ;;  %v1150_v40 = vmul.f32 %v3114_v35, %v1112_v39  ;;  %v2515_v38 = vld [vmem:[%s3416_s6 + $0x8] sm:$0xff]  }
 0x194   : > { %v2101_v41 = vpop.f32.mrf.mxu0  ;;  %2122 = vmatprep.subr.bf16.mxu1 %v2515_v38 }
 0x195   : > { %v1175_v0 = vmax.f32 %v1167_v36, 0.0  ;;  %v1165_v42 = vadd.f32 %v3119_v37, %v1150_v40  ;;  %v1153_v43 = vmul.f32 %v2101_v41, %v3114_v35  ;;  %2123 = vmatpush3.bf16.msra.mxu1 %v2515_v38 }
 0x196   : > { %v1115_v46 = vpop.f32.mrf.mxu0 }
 0x197   : > { %1205 = vst.msk [vmem:[#allocation3 + $0x31] sm:$0xff] %vm974_vm2, %v1175_v0  ;;  %v1173_v47 = vmax.f32 %v1165_v42, 0.0  ;;  %v1168_v48 = vadd.f32 %v3119_v37, %v1153_v43  ;;  %v1151_v50 = vmul.f32 %v3114_v35, %v1115_v46 }
 0x199   : > { %1203 = vst.msk [vmem:[#allocation3 + $0x11] sm:$0xff] %vm974_vm2, %v1173_v47  ;;  %v1176_v51 = vmax.f32 %v1168_v48, 0.0  ;;  %v1166_v52 = vadd.f32 %v3119_v37, %v1151_v50 }
 0x19b   : > { %1206 = vst.msk [vmem:[#allocation3 + $0x41] sm:$0xff] %vm974_vm2, %v1176_v51  ;;  %v1174_v53 = vmax.f32 %v1166_v52, 0.0 }
 0x19d   : > { %1204 = vst.msk [vmem:[#allocation3 + $0x21] sm:$0xff] %vm974_vm2, %v1174_v53 }
 0x19e   : > { %v3133_v58 = vld [vmem:[#allocation3 + $0x30] sm:$0xff] }
 0x19f   : > { %v1245_v3 = vld [vmem:[#allocation3 + $0x31] sm:$0xff] }
 0x1a0   : > { %v1220_v55 = vld [vmem:[#allocation3 + $0x11] sm:$0xff] }
 0x1a1   : > { %v2349_v56 = vpack.i.bf16 %v1220_v55, %v1219_v54  ;;  %v1228_v60 = vld [vmem:[#allocation3 + $0x12] sm:$0xff] }
 0x1a2   : > { %v3135_v59 = vld [vmem:[#allocation3 + $0x40] sm:$0xff]  ;;  %v2354_v63 = vpack.i.bf16 %v1228_v60, %v1227_v57  ;;  %v3152_v61 = vld [vmem:[#allocation3 + $0x10] sm:$0xff] }
 0x1a3   : > { %2350 = vrot.lane.b32.xlu0 %v2349_v56, %s2580_s26  ;;  %v2359_v1 = vpack.i.bf16 %v3135_v59, %v3133_v58  ;;  %v3140_v62 = vld [vmem:[#allocation3 + $0x41] sm:$0xff]  ;;  %v1253_v17 = vld [vmem:[#allocation3 + $0x32] sm:$0xff] }
 0x1a4   : > { %v3146_v4 = vld [vmem:[#allocation3 + $0x20] sm:$0xff]  ;;  %v2364_v7 = vpack.i.bf16 %v3140_v62, %v1245_v3 }
 0x1a5   : > { %2360 = vrot.lane.b32.xlu1 %v2359_v1, %s2585_s18  ;;  %v3154_v11 = vld [vmem:[#allocation3 + $0x42] sm:$0xff]  ;;  %v2384_v16 = vpack.i.bf16 %v3146_v4, %v3152_v61  ;;  %v2399_v39 = vpack.i.bf16 %v3133_v58, %v3146_v4 }
 0x1a6   : > { %v1244_v18 = vld [vmem:[#allocation3 + $0x21] sm:$0xff]  ;;  %v2369_v10 = vpack.i.bf16 %v3154_v11, %v1253_v17 }
 0x1a7   : > { %2355 = vrot.lane.b32.xlu0 %v2354_v63, %s2583_s13  ;;  %v2389_v21 = vpack.i.bf16 %v1244_v18, %v1220_v55  ;;  %v1252_v44 = vld [vmem:[#allocation3 + $0x22] sm:$0xff]  ;;  %v2374_v49 = vpack.i.bf16 %v1245_v3, %v1244_v18  ;;  %v1267_v63 = vld [vmem:[#allocation3 + $0x90] sm:$0xff] }
 0x1a8   : > { %v2394_v32 = vpack.i.bf16 %v1252_v44, %v1228_v60  ;;  %v2379_v6 = vpack.i.bf16 %v1253_v17, %v1252_v44 }
 0x1a9   : > { %2365 = vrot.lane.b32.xlu1 %v2364_v7, %s2587_s19 }
 0x1ab   : > { %2385 = vrot.lane.b32.xlu0 %v2384_v16, %s2585_s18 }
 0x1ad   : > { %2370 = vrot.lane.b32.xlu1 %v2369_v10, %s2588_s20  ;;  %v2104_v20 = vpop.f32.mrf.mxu0 }
 0x1ae   : > { %v1156_v22 = vmul.f32 %v2104_v20, %v3114_v35 }
 0x1af   : > { %2390 = vrot.lane.b32.xlu0 %v2389_v21, %s2587_s19  ;;  %v1128_v45 = vpop.f32.mrf.mxu0 }
 0x1b0   : > { %v1171_v24 = vadd.f32 %v3119_v37, %v1156_v22  ;;  %v1154_v25 = vmul.f32 %v3114_v35, %v1128_v45 }
 0x1b1   : > { %2375 = vrot.lane.b32.xlu1 %v2374_v49, %s2580_s26  ;;  %v2105_v28 = vpop.f32.mrf.mxu0 }
 0x1b2   : > { %v1179_v26 = vmax.f32 %v1171_v24, 0.0  ;;  %v1169_v29 = vadd.f32 %v3119_v37, %v1154_v25  ;;  %v1157_v30 = vmul.f32 %v2105_v28, %v3114_v35  ;;  %v1211_v24 = vld [vmem:[#allocation3] sm:$0xff] }
 0x1b3   : > { %2395 = vrot.lane.b32.xlu0 %v2394_v32, %s2588_s20  ;;  %v1131_v31 = vpop.f32.mrf.mxu0 }
 0x1b4   : > { %1209 = vst.msk [vmem:[#allocation3 + $0x71] sm:$0xff] %vm974_vm2, %v1179_v26  ;;  %v1177_v33 = vmax.f32 %v1169_v29, 0.0  ;;  %v1172_v34 = vadd.f32 %v3119_v37, %v1157_v30  ;;  %v1155_v23 = vmul.f32 %v3114_v35, %v1131_v31  ;;  %v2516_v35 = vld [vmem:[%s3416_s6] sm:$0xff]  }
 0x1b5   : > { %2380 = vrot.lane.b32.xlu1 %v2379_v6, %s2583_s13  ;;  %2124 = vmatprep.subr.bf16.mxu1 %v2516_v35 }
 0x1b6   : > { %1207 = vst.msk [vmem:[#allocation3 + $0x51] sm:$0xff] %vm974_vm2, %v1177_v33  ;;  %v1180_v9 = vmax.f32 %v1172_v34, 0.0  ;;  %v1170_v13 = vadd.f32 %v3119_v37, %v1155_v23  ;;  %2125 = vmatpush3.bf16.msra.mxu1 %v2516_v35 }
 0x1b7   : > { %2400 = vrot.lane.b32.xlu0 %v2399_v39, %s2589_s25 }
 0x1b8   : > { %1210 = vst.msk [vmem:[#allocation3 + $0x81] sm:$0xff] %vm974_vm2, %v1180_v9  ;;  %v1178_v15 = vmax.f32 %v1170_v13, 0.0 }
 0x1ba   : > { %1208 = vst.msk [vmem:[#allocation3 + $0x61] sm:$0xff] %vm974_vm2, %v1178_v15 }
 0x1bb   : > { %2405 = vrot.lane.b32.xlu0 %v2374_v49, %s2590_s21  ;;  %v3228_v48 = vld [vmem:[#allocation3 + $0x70] sm:$0xff] }
 0x1bc   : > { %v1249_v54 = vld [vmem:[#allocation3 + $0x71] sm:$0xff] }
 0x1bd   : > { %v3212_v37 = vld [vmem:[#allocation3 + $0x50] sm:$0xff] }
 0x1be   : > { %v2414_v36 = vpack.i.bf16 %v3212_v37, %v3135_v59  ;;  %v1279_v40 = vld [vmem:[#allocation3 + $0x52] sm:$0xff] }
 0x1bf   : > { %2410 = vrot.lane.b32.xlu0 %v2379_v6, %s2591_s22  ;;  %v1271_v41 = vld [vmem:[#allocation3 + $0x51] sm:$0xff]  ;;  %v2429_v0 = vpack.i.bf16 %v1279_v40, %v3154_v11  ;;  %v1242_v46 = vld [vmem:[#allocation3 + $0x80] sm:$0xff] }
 0x1c0   : > { %2415 = vrot.lane.b32.xlu1 %v2414_v36, %s2589_s25  ;;  %v2419_v42 = vpack.i.bf16 %v1271_v41, %v3140_v62  ;;  %v2439_v50 = vpack.i.bf16 %v1242_v46, %v3228_v48  ;;  %v1250_v52 = vld [vmem:[#allocation3 + $0x81] sm:$0xff]  ;;  %v1257_v1 = vld [vmem:[#allocation3 + $0x72] sm:$0xff]  ;;  %v2454_v3 = vpack.i.bf16 %v1267_v63, %v1242_v46 }
 0x1c1   : > { %v3222_v43 = vld [vmem:[#allocation3 + $0x60] sm:$0xff]  ;;  %v2444_v55 = vpack.i.bf16 %v1250_v52, %v1249_v54  ;;  %v1275_v11 = vld [vmem:[#allocation3 + $0x91] sm:$0xff] }
 0x1c2   : > { %v2474_v47 = vpack.i.bf16 %v3222_v43, %v3212_v37  ;;  %v1248_v51 = vld [vmem:[#allocation3 + $0x61] sm:$0xff]  ;;  %v2489_v2 = vpack.i.bf16 %v3228_v48, %v3222_v43  ;;  %v2469_v8 = vpack.i.bf16 %v1275_v11, %v1250_v52 }
 0x1c3   : > { %2430 = vrot.lane.b32.xlu0 %v2429_v0, %s2591_s22  ;;  %v2479_v53 = vpack.i.bf16 %v1248_v51, %v1271_v41  ;;  %v1256_v56 = vld [vmem:[#allocation3 + $0x62] sm:$0xff]  ;;  %v2494_v5 = vpack.i.bf16 %v1249_v54, %v1248_v51 }
 0x1c4   : > { %2420 = vrot.lane.b32.xlu1 %v2419_v42, %s2590_s21  ;;  %v1258_v57 = vld [vmem:[#allocation3 + $0x82] sm:$0xff]  ;;  %v2484_v60 = vpack.i.bf16 %v1256_v56, %v1279_v40  ;;  %v2499_v7 = vpack.i.bf16 %v1257_v1, %v1256_v56 }
 0x1c5   : > { %v2449_v62 = vpack.i.bf16 %v1258_v57, %v1257_v1  ;;  %v2504_v16 = vpack.i.bf16 %v1283_v14, %v1258_v57 }
 0x1c7   : > { %2435 = vrot.lane.b32.xlu0 %v2429_v0, %s2583_s13 }
 0x1c8   : > { %2425 = vrot.lane.b32.xlu1 %v2419_v42, %s2580_s26 }
 0x1cb   : > { %2475 = vrot.lane.b32.xlu0 %v2474_v47, %s2585_s18 }
 0x1cc   : > { %2440 = vrot.lane.b32.xlu1 %v2439_v50, %s2585_s18 }
 0x1cf   : > { %2480 = vrot.lane.b32.xlu0 %v2479_v53, %s2587_s19 }
 0x1d0   : > { %2445 = vrot.lane.b32.xlu1 %v2444_v55, %s2587_s19  ;;  %s1991_s19 = sshll.u32 %s2659_s9, 9 }
 0x1d3   : > { %2485 = vrot.lane.b32.xlu0 %v2484_v60, %s2588_s20 }
 0x1d4   : > { %2450 = vrot.lane.b32.xlu1 %v2449_v62, %s2588_s20 }
 0x1d7   : > { %2490 = vrot.lane.b32.xlu0 %v2489_v2, %s2589_s25 }
 0x1d8   : > { %2455 = vrot.lane.b32.xlu1 %v2454_v3, %s2589_s25  ;;  %s3362_s25 = scalar_lea.hbm %s3418_s8, %s1991_s19 }
 0x1db   : > { %2495 = vrot.lane.b32.xlu0 %v2494_v5, %s2590_s21 }
 0x1dc   : > { %2460 = vrot.lane.b32.xlu1 %v2494_v5, %s2580_s26  ;;  %s296_s26 = sand.u32 1, %s2569_s28  }
 0x1dd   : > { %s1833_s9 = scalar_lea.sflag [#allocation5], %s296_s26 }
 0x1df   : > { %2500 = vrot.lane.b32.xlu0 %v2499_v7, %s2591_s22 }
 0x1e0   : > { %2465 = vrot.lane.b32.xlu1 %v2499_v7, %s2583_s13  ;;  %s1958_s13 = sshll.u32 %s296_s26, 5 }
 0x1e1   : > { %s3341_s18 = scalar_lea.vmem [#allocation4], %s1958_s13 }
 0x1e2   : > { %s1846_s20 = sshll.u32 %s3341_s18, 4  ;;  %s3364_s20 = int_to_ptr.vmem [resolvable:$true] %s1846_s20 }
 0x1e3   : > { %s2517_s12 = scalar_lea.vmem %s3364_s20, 512 }
 0x1e4   : > { %2470 = vrot.lane.b32.xlu1 %v2469_v8, %s2590_s21  ;;  %p2518_p11 = scmp.ne.s32.totalorder %s3364_s20, %s2517_s12  ;;  %s2521_s21 = sshll.u32 %s2592_s17, 4  ;;  %s2522_s21 = int_to_ptr.vmem [resolvable:$false] %s2521_s21 }
 0x1e5   : > { %s2523_s13 = scalar_lea.vmem %s2522_s21, 1024  ;;  %p2524_p0 = scmp.lt.s32.totalorder %s3364_s20, %s2522_s21 }
 0x1e6   : > { %p2519_p12 = pnand %p2518_p11, %p2676_p5  ;;  %p2525_p1 = scmp.lt.s32.totalorder %s2523_s13, %s2517_s12 }
 0x1e8   : > { %2505 = vrot.lane.b32.xlu1 %v2504_v16, %s2591_s22  ;;  %p2520_p13 = pneg %p2519_p12  ;;  %p2526_p2 = por %p2525_p1, %p2524_p0 }
 0x1ea   : > { %p2527_p3 = pnand %p2526_p2, %p2520_p13 }
 0x215   : > { %v2351_v17 = vpop.permute.xlu0 %2350 }
 0x216   : > { %v2353_v45 = vunpack.i.h.bf16 %v2351_v17  ;;  %v2352_v49 = vunpack.i.l.bf16 %v2351_v17 }
 0x217   : > { %v2361_v18 = vpop.permute.xlu1 %2360 }
 0x218   : > { %v1540_v30 = vsel %vm974_vm2, %v1211_v24, %v2352_v49  ;;  %v1541_v31 = vsel %vm974_vm2, %v3152_v61, %v2353_v45  ;;  %v2363_v34 = vunpack.i.h.bf16 %v2361_v18  ;;  %v2362_v23 = vunpack.i.l.bf16 %v2361_v18 }
 0x219   : > { %v2356_v19 = vpop.permute.xlu0 %2355 }
 0x21a   : > { %v2358_v6 = vunpack.i.h.bf16 %v2356_v19  ;;  %v2357_v33 = vunpack.i.l.bf16 %v2356_v19 }
 0x21b   : > { %v3247_v10 = vpop.permute.xlu1 %2365 }
 0x21c   : > { %v1548_v42 = vsel %vm992_vm5, %v1540_v30, %v2357_v33  ;;  %v1549_v46 = vsel %vm992_vm5, %v1541_v31, %v2358_v6  ;;  %v2368_v57 = vunpack.i.h.bf16 %v3247_v10  ;;  %v2367_v60 = vunpack.i.l.bf16 %v3247_v10 }
 0x21d   : > { %v2386_v12 = vpop.permute.xlu0 %2385 }
 0x21e   : > { %v2388_v38 = vunpack.i.h.bf16 %v2386_v12  ;;  %v2387_v39 = vunpack.i.l.bf16 %v2386_v12 }
 0x21f   : > { %v3249_v20 = vpop.permute.xlu1 %2370 }
 0x220   : > { %v1557_v51 = vsel %vm1010_vm7, %v1549_v46, %v2388_v38 }
 0x221   : > { %v2391_v21 = vpop.permute.xlu0 %2390 }
 0x222   : > { %v2393_v9 = vunpack.i.h.bf16 %v2391_v21  ;;  %v2392_v13 = vunpack.i.l.bf16 %v2391_v21  ;;  %v2373_v21 = vunpack.i.h.bf16 %v3249_v20 }
 0x223   : > { %v2376_v22 = vpop.permute.xlu1 %2375 }
 0x224   : > { %v2378_v27 = vunpack.i.h.bf16 %v2376_v22  ;;  %v2377_v28 = vunpack.i.l.bf16 %v2376_v22  ;;  %v1565_v54 = vsel %vm1028_vm9, %v1557_v51, %v2393_v9  ;;  %v2372_v22 = vunpack.i.l.bf16 %v3249_v20 }
 0x225   : > { %v2396_v44 = vpop.permute.xlu0 %2395 }
 0x226   : > { %v1543_v15 = vsel %vm974_vm2, %v3133_v58, %v2378_v27  ;;  %v1542_v35 = vsel %vm974_vm2, %v3146_v4, %v2377_v28  ;;  %v2398_v36 = vunpack.i.h.bf16 %v2396_v44  ;;  %v2397_v40 = vunpack.i.l.bf16 %v2396_v44 }
 0x227   : > { %v2381_v25 = vpop.permute.xlu1 %2380  ;;  %v1556_v58 = vsel %vm1010_vm7, %v1548_v42, %v2387_v39 }
 0x228   : > { %v2383_v32 = vunpack.i.h.bf16 %v2381_v25  ;;  %v2382_v26 = vunpack.i.l.bf16 %v2381_v25  ;;  %v1564_v53 = vsel %vm1028_vm9, %v1556_v58, %v2392_v13  ;;  %v1574_v62 = vsel %vm1572_vm13, %v1565_v54, %v2398_v36 }
 0x229   : > { %v2401_v29 = vpop.permute.xlu0 %2400  ;;  %v1573_v1 = vsel %vm1572_vm13, %v1564_v53, %v2397_v40 }
 0x22a   : > { %v1550_v41 = vsel %vm992_vm5, %v1542_v35, %v2382_v26  ;;  %v1551_v61 = vsel %vm992_vm5, %v1543_v15, %v2383_v32  ;;  %v2403_v47 = vunpack.i.h.bf16 %v2401_v29  ;;  %v2402_v50 = vunpack.i.l.bf16 %v2401_v29 }
 0x22b   : > { %v1558_v55 = vsel %vm1010_vm7, %v1550_v41, %v2362_v23  ;;  %v1559_v56 = vsel %vm1010_vm7, %v1551_v61, %v2363_v34 }
 0x22c   : > { %v1582_v2 = vsel %vm1581_vm14, %v1573_v1, %v2402_v50  ;;  %v1583_v3 = vsel %vm1581_vm14, %v1574_v62, %v2403_v47  ;;  %v1566_v16 = vsel %vm1028_vm9, %v1558_v55, %v2367_v60  ;;  %v1567_v17 = vsel %vm1028_vm9, %v1559_v56, %v2368_v57 }
 0x22d   : > { %v2406_v0 = vpop.permute.xlu0 %2405  ;;  %v1575_v24 = vsel %vm1572_vm13, %v1566_v16, %v2372_v22  ;;  %v1576_v25 = vsel %vm1572_vm13, %v1567_v17, %v2373_v21 }
 0x22e   : > { %v2408_v52 = vunpack.i.h.bf16 %v2406_v0  ;;  %v2407_v4 = vunpack.i.l.bf16 %v2406_v0 }
 0x230   : > { %v1591_v8 = vsel %vm1590_vm15, %v1582_v2, %v2407_v4  ;;  %v1592_v14 = vsel %vm1590_vm15, %v1583_v3, %v2408_v52 }
 0x231   : > { %v2411_v63 = vpop.permute.xlu0 %2410 }
 0x232   : > { %v2413_v5 = vunpack.i.h.bf16 %v2411_v63  ;;  %v2412_v7 = vunpack.i.l.bf16 %v2411_v63  ;;  %v2416_v11 = vpop.permute.xlu1 %2415 }
 0x233   : > { %v2418_v10 = vunpack.i.h.bf16 %v2416_v11  ;;  %v2417_v12 = vunpack.i.l.bf16 %v2416_v11 }
 0x234   : > { %v1600_v18 = vsel %vm1599_vm0, %v1591_v8, %v2412_v7  ;;  %v1601_v19 = vsel %vm1599_vm0, %v1592_v14, %v2413_v5 }
 0x235   : > { %v1608_v44 = vpack.c.bf16 %v1601_v19, %v1600_v18  ;;  %v2431_v45 = vpop.permute.xlu0 %2430  ;;  %v1585_v32 = vsel %vm1581_vm14, %v1576_v25, %v2418_v10  ;;  %v1584_v26 = vsel %vm1581_vm14, %v1575_v24, %v2417_v12 }
 0x236   : > { %v2421_v49 = vpop.permute.xlu1 %2420  ;;  %v2433_v29 = vunpack.i.h.bf16 %v2431_v45  ;;  %v2432_v30 = vunpack.i.l.bf16 %v2431_v45 }
 0x237   : > { %v2423_v27 = vunpack.i.h.bf16 %v2421_v49  ;;  %v2422_v28 = vunpack.i.l.bf16 %v2421_v49  ;;  %2126 = vmatprep.mubr.msk.bf16.mxu1 %vm1733_vm1, %v1608_v44 }
 0x239   : > { %v1593_v31 = vsel %vm1590_vm15, %v1584_v26, %v2422_v28  ;;  %v1594_v20 = vsel %vm1590_vm15, %v1585_v32, %v2423_v27  ;;  %v2436_v6 = vpop.permute.xlu0 %2435 }
 0x23a   : > { %v1602_v33 = vsel %vm1599_vm0, %v1593_v31, %v2432_v30  ;;  %v1603_v34 = vsel %vm1599_vm0, %v1594_v20, %v2433_v29  ;;  %v2426_v23 = vpop.permute.xlu1 %2425  ;;  %v2438_v46 = vunpack.i.h.bf16 %v2436_v6  ;;  %v2437_v47 = vunpack.i.l.bf16 %v2436_v6 }
 0x23b   : > { %v1609_v38 = vpack.c.bf16 %v1603_v34, %v1602_v33  ;;  %v2428_v35 = vunpack.i.h.bf16 %v2426_v23  ;;  %v2427_v36 = vunpack.i.l.bf16 %v2426_v23 }
 0x23d   : > { %2127 = vmatmul.mubr.msk.bf16.vlgmr.msra.gmra.mxu1 %vm1733_vm1, %v1609_v38  ;;  %v2476_v39 = vpop.permute.xlu0 %2475  ;;  %v1544_v61 = vsel %vm974_vm2, %v3135_v59, %v2427_v36  ;;  %v1545_v0 = vsel %vm974_vm2, %v3212_v37, %v2428_v35 }
 0x23e   : > { %v2441_v9 = vpop.permute.xlu1 %2440  ;;  %v2478_v51 = vunpack.i.h.bf16 %v2476_v39  ;;  %v2477_v58 = vunpack.i.l.bf16 %v2476_v39  ;;  %v1552_v52 = vsel %vm992_vm5, %v1544_v61, %v2437_v47  ;;  %v1553_v4 = vsel %vm992_vm5, %v1545_v0, %v2438_v46 }
 0x23f   : > { %v2443_v60 = vunpack.i.h.bf16 %v2441_v9  ;;  %v2442_v14 = vunpack.i.l.bf16 %v2441_v9 }
 0x240   : > { %v1561_v37 = vsel %vm1010_vm7, %v1553_v4, %v2478_v51  ;;  %v1560_v63 = vsel %vm1010_vm7, %v1552_v52, %v2477_v58  ;;  %v2110_v52 = vpop.f32.mrf.mxu1 }
 0x241   : > { %v2481_v13 = vpop.permute.xlu0 %2480 }
 0x242   : > { %v3292_v15 = vpop.permute.xlu1 %2445  ;;  %v2483_v53 = vunpack.i.h.bf16 %v2481_v13  ;;  %v2482_v54 = vunpack.i.l.bf16 %v2481_v13  ;;  %v1675_v4 = vpop.f32.mrf.mxu1 }
 0x243   : > { %v2448_v16 = vunpack.i.h.bf16 %v3292_v15  ;;  %v2447_v29 = vunpack.i.l.bf16 %v3292_v15 }
 0x244   : > { %v1568_v5 = vsel %vm1028_vm9, %v1560_v63, %v2482_v54  ;;  %v1569_v7 = vsel %vm1028_vm9, %v1561_v37, %v2483_v53  ;;  %v2111_v53 = vpop.f32.mrf.mxu1 }
 0x245   : > { %v2486_v40 = vpop.permute.xlu0 %2485 }
 0x246   : > { %v3294_v41 = vpop.permute.xlu1 %2450  ;;  %v2488_v55 = vunpack.i.h.bf16 %v2486_v40  ;;  %v2487_v56 = vunpack.i.l.bf16 %v2486_v40  ;;  %v1678_v54 = vpop.f32.mrf.mxu1 }
 0x247   : > { %v2453_v6 = vunpack.i.h.bf16 %v3294_v41  ;;  %v2452_v33 = vunpack.i.l.bf16 %v3294_v41 }
 0x248   : > { %v1577_v17 = vsel %vm1572_vm13, %v1568_v5, %v2487_v56  ;;  %v1578_v18 = vsel %vm1572_vm13, %v1569_v7, %v2488_v55  ;;  %v2114_v55 = vpop.f32.mrf.mxu1 }
 0x249   : > { %v2491_v42 = vpop.permute.xlu0 %2490 }
 0x24a   : > { %v2456_v50 = vpop.permute.xlu1 %2455  ;;  %v2493_v59 = vunpack.i.h.bf16 %v2491_v42  ;;  %v2492_v1 = vunpack.i.l.bf16 %v2491_v42  ;;  %v1691_v56 = vpop.f32.mrf.mxu1 }
 0x24b   : > { %v2458_v23 = vunpack.i.h.bf16 %v2456_v50  ;;  %v2457_v38 = vunpack.i.l.bf16 %v2456_v50 }
 0x24c   : > { %v1586_v10 = vsel %vm1581_vm14, %v1577_v17, %v2492_v1  ;;  %v1587_v12 = vsel %vm1581_vm14, %v1578_v18, %v2493_v59 }
 0x24d   : > { %v2496_v57 = vpop.permute.xlu0 %2495 }
 0x24e   : > { %v2461_v62 = vpop.permute.xlu1 %2460  ;;  %v2498_v2 = vunpack.i.h.bf16 %v2496_v57  ;;  %v2497_v3 = vunpack.i.l.bf16 %v2496_v57  ;;  %v2115_v57 = vpop.f32.mrf.mxu1 }
 0x24f   : > { %v2463_v11 = vunpack.i.h.bf16 %v2461_v62  ;;  %v2462_v8 = vunpack.i.l.bf16 %v2461_v62 }
 0x250   : > { %v1595_v45 = vsel %vm1590_vm15, %v1586_v10, %v2497_v3  ;;  %v1596_v49 = vsel %vm1590_vm15, %v1587_v12, %v2498_v2 }
 0x251   : > { %v2501_v19 = vpop.permute.xlu0 %2500  ;;  %v1547_v27 = vsel %vm974_vm2, %v3228_v48, %v2463_v11  ;;  %v1546_v28 = vsel %vm974_vm2, %v3222_v43, %v2462_v8  ;;  %vm1823_vm2 = vcmask 60416  }
 0x252   : > { %v2503_v21 = vunpack.i.h.bf16 %v2501_v19  ;;  %v2502_v22 = vunpack.i.l.bf16 %v2501_v19  ;;  %v2466_v44 = vpop.permute.xlu1 %2465 }
 0x253   : > { %v2468_v24 = vunpack.i.h.bf16 %v2466_v44  ;;  %v2467_v25 = vunpack.i.l.bf16 %v2466_v44 }
 0x254   : > { %v1604_v32 = vsel %vm1599_vm0, %v1595_v45, %v2502_v22  ;;  %v1605_v26 = vsel %vm1599_vm0, %v1596_v49, %v2503_v21 }
 0x255   : > { %v1610_v30 = vpack.c.bf16 %v1605_v26, %v1604_v32  ;;  %v1554_v31 = vsel %vm992_vm5, %v1546_v28, %v2467_v25  ;;  %v1555_v20 = vsel %vm992_vm5, %v1547_v27, %v2468_v24 }
 0x256   : > { %v1562_v48 = vsel %vm1010_vm7, %v1554_v31, %v2442_v14  ;;  %v1563_v34 = vsel %vm1010_vm7, %v1555_v20, %v2443_v60  ;;  %v2471_v43 = vpop.permute.xlu1 %2470  ;;  %v1694_v60 = vpop.f32.mrf.mxu1 }
 0x257   : > { %v1570_v39 = vsel %vm1028_vm9, %v1562_v48, %v2447_v29  ;;  %v1571_v9 = vsel %vm1028_vm9, %v1563_v34, %v2448_v16  ;;  %2130 = vmatprep.mubr.msk.bf16.mxu1 %vm1733_vm1, %v1610_v30  ;;  %v2473_v13 = vunpack.i.h.bf16 %v2471_v43  ;;  %v2472_v15 = vunpack.i.l.bf16 %v2471_v43 }
 0x258   : > { %v1579_v35 = vsel %vm1572_vm13, %v1570_v39, %v2452_v33  ;;  %v1580_v36 = vsel %vm1572_vm13, %v1571_v9, %v2453_v6 }
 0x259   : > { %v1588_v40 = vsel %vm1581_vm14, %v1579_v35, %v2457_v38  ;;  %v1589_v41 = vsel %vm1581_vm14, %v1580_v36, %v2458_v23 }
 0x25a   : > { %v2506_v61 = vpop.permute.xlu1 %2505  ;;  %v1597_v46 = vsel %vm1590_vm15, %v1588_v40, %v2472_v15  ;;  %v1598_v47 = vsel %vm1590_vm15, %v1589_v41, %v2473_v13 }
 0x25b   : > { %v2508_v0 = vunpack.i.h.bf16 %v2506_v61  ;;  %v2507_v42 = vunpack.i.l.bf16 %v2506_v61 }
 0x25d   : > { %v1606_v50 = vsel %vm1599_vm0, %v1597_v46, %v2507_v42  ;;  %v1607_v51 = vsel %vm1599_vm0, %v1598_v47, %v2508_v0 }
 0x25e   : > { %v1611_v58 = vpack.c.bf16 %v1607_v51, %v1606_v50 }
 0x260   : > { %2131 = vmatmul.mubr.msk.bf16.gmra.mxu1 %vm1733_vm1, %v1611_v58 }
 0x2fd   : > { %v2128_v59 = vpop.f32.mrf.mxu1 }
 0x2fe   : > { %v1793_v1 = vadd.f32 %v2128_v59, %v2110_v52 }
 0x2ff   : > { %v1784_v62 = vpop.f32.mrf.mxu1 }
 0x300   : > { %v1817_v37 = vpack.c.bf16 %v1793_v1, %v1793_v1  ;;  %v1785_v63 = vadd.f32 %v1784_v62, %v1675_v4 }
 0x301   : > { %v2129_v2 = vpop.f32.mrf.mxu1 }
 0x302   : > { %1826 = vst.msk [vmem:[%s3341_s18 + $0x8] sm:$0xf] %vm1823_vm2, %v1817_v37  ;;  %v1815_v3 = vpack.c.bf16 %v1785_v63, %v1785_v63  ;;  %v1796_v5 = vadd.f32 %v2129_v2, %v2111_v53 }
 0x303   : > { %v1787_v7 = vpop.f32.mrf.mxu1 }
 0x304   : > { %1824 = vst.msk [vmem:[%s3341_s18] sm:$0xf] %vm1823_vm2, %v1815_v3  ;;  %v1818_v11 = vpack.c.bf16 %v1796_v5, %v1796_v5  ;;  %v1788_v8 = vadd.f32 %v1787_v7, %v1678_v54 }
 0x306   : > { %1827 = vst.msk [vmem:[%s3341_s18 + $0xc] sm:$0xf] %vm1823_vm2, %v1818_v11  ;;  %v1816_v14 = vpack.c.bf16 %v1788_v8, %v1788_v8 }
 0x308   : > { %1825 = vst.msk [vmem:[%s3341_s18 + $0x4] sm:$0xf] %vm1823_vm2, %v1816_v14 }
 0x320   : > { %v2132_v16 = vpop.f32.mrf.mxu1 }
 0x321   : > { %v1809_v17 = vadd.f32 %v2132_v16, %v2114_v55 }
 0x322   : > { %v1800_v18 = vpop.f32.mrf.mxu1 }
 0x323   : > { %v1821_v19 = vpack.c.bf16 %v1809_v17, %v1809_v17  ;;  %v1801_v10 = vadd.f32 %v1800_v18, %v1691_v56 }
 0x324   : > { %v2133_v12 = vpop.f32.mrf.mxu1 }
 0x325   : > { %1830 = vst.msk [vmem:[%s3341_s18 + $0x18] sm:$0xf] %vm1823_vm2, %v1821_v19  ;;  %v1819_v21 = vpack.c.bf16 %v1801_v10, %v1801_v10  ;;  %v1812_v22 = vadd.f32 %v2133_v12, %v2115_v57 }
 0x326   : > { %v1803_v44 = vpop.f32.mrf.mxu1 }
 0x327   : > { %1828 = vst.msk [vmem:[%s3341_s18 + $0x10] sm:$0xf] %vm1823_vm2, %v1819_v21  ;;  %v1822_v45 = vpack.c.bf16 %v1812_v22, %v1812_v22  ;;  %v1804_v49 = vadd.f32 %v1803_v44, %v1694_v60 }
 0x329   : > { %1831 = vst.msk [vmem:[%s3341_s18 + $0x1c] sm:$0xf] %vm1823_vm2, %v1822_v45  ;;  %v1820_v24 = vpack.c.bf16 %v1804_v49, %v1804_v49 }
 0x32b   : > { %1829 = vst.msk [vmem:[%s3341_s18 + $0x14] sm:$0xf] %vm1823_vm2, %v1820_v24 }
 0x32c   : > { %2530 = shalt.err (!%p2527_p3)
}
 0x32d   : > { %s2531_s18 = scalar_lea.hbm %s3362_s25, 512  ;;  %s2535_s23 = scalar_lea.hbm %s3418_s8, 1024 }
 0x32e   : > { %p2532_p4 = scmp.ne.s32.totalorder %s3362_s25, %s2531_s18  ;;  %p2536_p9 = scmp.lt.s32.totalorder %s3362_s25, %s3418_s8 }
 0x32f   : > { %p2537_p10 = scmp.lt.s32.totalorder %s2535_s23, %s2531_s18 }
 0x330   : > { %p2533_p7 = pnand %p2532_p4, %p2676_p5 }
 0x331   : > { %p2538_p11 = por %p2537_p10, %p2536_p9 }
 0x332   : > { %p2534_p8 = pneg %p2533_p7 }
 0x334   : > { %p2539_p12 = pnand %p2538_p11, %p2534_p8 }
 0x336   : > { %2542 = shalt.err (!%p2539_p12)
}
 0x337   : > { %2137 = dma.vmem_to_hbm [thread:$0]  (%p2676_p5), %s3364_s20, 512, %s3362_s25, %s1833_s9, %s2591_s22, %s2591_s22, %s2581_s10  }
 0x338 PF: > { %p2143_p13 = scmp.ge.s32.totalorder %s2577_s30, 2  ;;  %s1861_s12 = sand.u32 1, %s2565_s27  }
 0x339   : > { %s1862_s21 = scalar_lea.sflag [#allocation5], %s1861_s12 }
 0x33a   : > { %p2140_p0 = pnand %p2143_p13, %p2680_p6 }
 0x33c   : > { %p2141_p1 = pneg %p2140_p0 }
 0x33e   : > { %2560 = dma.done.wait (%p2141_p1), %s1862_s21, 512  }
 0x33f   : > { %2562 = vsyncadd (%p2141_p1), %s1862_s21, 4294966784  ;;  %p18_p2 = scmp.ge.s32.totalorder %s2663_s11, 4   ;;  %s3421_s27 = smov %s2569_s28 }
 0x340   : > { %s3422_s28 = smov %s2573_s29  ;;  %s3423_s29 = smov %s2674_s14 }
 0x341   : > { %s3424_s30 = smov %s2663_s11  ;;  %20 = sbr.rel (!%p18_p2) target bundleno = 3 (0x3), region = 160 }
 0x346   :  { %1867 = vsyncpa [#allocation5], 1 }
 0x347   :  { %1869 = vsyncpa [#allocation5 + $0x1], 1 }

</bundles_post_ra>
